<compile_context>
chip_gen: v5e
topology: v5e:2x2
jax: 0.10.0
libtpu: 0.0.40
codegen_flags: <defaults>
</compile_context>

<pallas_src>
import functools

import jax
import jax.numpy as jnp
from jax.experimental import pallas as pl
from jax.experimental.pallas import tpu as pltpu


_MARGIN = 128  # lane-aligned zero margin on each side of the flat image


def resblock_kernel(x_ref, w_ref, b_ref, mneg_ref, mpos_ref, o_ref, buf_ref,
                    *, H, W, Bt):
    # x_ref:    (Bt, C, H*W)    input images, channels-first, flat spatial
    # w_ref:    (3, C, 3*C)     conv1 weight, bf16, banded by ky; cols = (kx, Cin)
    # b_ref:    (C, 1)          conv1 bias, f32
    # mneg_ref: (C, H*W)        bf16 mask, 0 on column 0    (valid for dx = -1)
    # mpos_ref: (C, H*W)        bf16 mask, 0 on column W-1  (valid for dx = +1)
    # o_ref:    (Bt, C, H*W)    output (lane-dense: last dim = H*W)
    # buf_ref:  (C, H*W + 256)  bf16 VMEM scratch: margin-padded flat image
    C = b_ref.shape[0]
    P = H * W
    M = _MARGIN

    # Zero only the (lane-aligned) margins; the interior is always fully
    # overwritten before it is read.  Done every step so megacore batch
    # splitting stays correct.
    buf_ref[:, 0:M] = jnp.zeros((C, M), jnp.bfloat16)
    buf_ref[:, M + P:M + P + M] = jnp.zeros((C, M), jnp.bfloat16)

    # Per-step invariants (already in their final dtypes; no per-step casts).
    w = w_ref[...]            # (3, C, 3C) bf16
    bias = b_ref[...]         # (C, 1) f32, broadcasts over lanes
    m_neg = mneg_ref[...]     # (C, P) bf16
    m_pos = mpos_ref[...]     # (C, P) bf16

    def conv(img_f32):
        # img_f32: (C, P) f32.  Returns conv1(img) without bias, f32 accum.
        buf_ref[:, M:M + P] = img_f32.astype(jnp.bfloat16)   # aligned store
        acc = None
        for band, dy in enumerate((-1, 0, 1)):
            taps = []
            for dx in (-1, 0, 1):
                start = M + dy * W + dx              # static lane offset
                t = buf_ref[:, start:start + P]      # (C, P) bf16 shifted view
                if dx == -1:
                    t = t * m_neg                    # zero row-crossing reads
                elif dx == 1:
                    t = t * m_pos
                taps.append(t)
            band_patch = jnp.concatenate(taps, axis=0)           # (3C, P) bf16
            part = jnp.dot(w[band], band_patch,
                           preferred_element_type=jnp.float32)   # (C, P) f32
            acc = part if acc is None else acc + part
        return acc

    for bi in range(Bt):
        x = x_ref[bi].astype(jnp.float32)        # (C, P): conv input + residual
        h = conv(x) + bias
        h = jnp.maximum(h, 0.01 * h)             # LeakyReLU(0.01), f32 on VPU
        out = conv(h) + bias + x                 # fused bias + residual epilogue
        o_ref[bi] = out.astype(o_ref.dtype)


def _images_per_step(B, C, P):
    """Amortize per-step pipeline overhead over several images for large
    batches, but keep >= 2 grid steps (both v7x TensorCores busy) and cap the
    per-step block at ~2 MiB so double-buffered blocks stay small."""
    cap = max(1, (2 << 20) // (C * P * 4))
    best = 1
    for bt in range(1, B // 2 + 1):
        if B % bt == 0 and bt <= cap:
            best = bt
    return best


@jax.jit
def resblock_forward(x_nchw, w_oihw, bias):
    """Pallas ResBlock forward.  x_nchw: (B, C, H, W), w_oihw: (C, C, 3, 3)."""
    B, C, H, W = x_nchw.shape
    P = H * W
    assert P % 128 == 0, "flattened spatial dim must be lane-dense (mult of 128)"
    assert W + 1 <= _MARGIN, "image row wider than the scratch margin"
    Bt = _images_per_step(B, C, P)

    x_flat = x_nchw.reshape(B, C, P)                     # free row-major reshape
    # OIHW -> (ky, O, kx, I) -> (3, Cout, 3*Cin): one ky-band per leading index,
    # columns ordered (kx, Cin) to match the in-kernel band patches.  Cast to
    # bf16 once here (MXU operand dtype), not per grid step.
    w_bands = jnp.transpose(w_oihw, (2, 0, 3, 1)).reshape(3, C, 3 * C)
    w_bands = w_bands.astype(jnp.bfloat16)
    b_col = bias.astype(jnp.float32).reshape(C, 1)

    # dx = -1 / +1 column-boundary masks, built once (constant-folded under jit)
    # and fed through constant index maps instead of per-step broadcasted_iota.
    col = jnp.arange(P, dtype=jnp.int32) % W
    m_neg = jnp.broadcast_to((col != 0).astype(jnp.bfloat16), (C, P))
    m_pos = jnp.broadcast_to((col != (W - 1)).astype(jnp.bfloat16), (C, P))

    kernel = functools.partial(resblock_kernel, H=H, W=W, Bt=Bt)
    out_flat = pl.pallas_call(
        kernel,
        out_shape=jax.ShapeDtypeStruct((B, C, P), x_nchw.dtype),
        grid_spec=pltpu.PrefetchScalarGridSpec(
            num_scalar_prefetch=0,
            grid=(B // Bt,),
            in_specs=[
                pl.BlockSpec((Bt, C, P), lambda g: (g, 0, 0)),
                pl.BlockSpec((3, C, 3 * C), lambda g: (0, 0, 0)),
                pl.BlockSpec((C, 1), lambda g: (0, 0)),
                pl.BlockSpec((C, P), lambda g: (0, 0)),
                pl.BlockSpec((C, P), lambda g: (0, 0)),
            ],
            out_specs=pl.BlockSpec((Bt, C, P), lambda g: (g, 0, 0)),
            scratch_shapes=[pltpu.VMEM((C, P + 2 * _MARGIN), jnp.bfloat16)],
        ),
        compiler_params=pltpu.CompilerParams(
            dimension_semantics=("parallel",)),
    )(x_flat, w_bands, b_col, m_neg, m_pos)
    return out_flat.reshape(B, C, H, W)


# ---------------- pure-JAX reference for correctness check ----------------
def _conv_ref(x_nhwc, w_hwio, b):
    y = jax.lax.conv_general_dilated(
        x_nhwc, w_hwio, window_strides=(1, 1), padding='SAME',
        dimension_numbers=('NHWC', 'HWIO', 'NHWC'),
        precision=jax.lax.Precision.HIGHEST)
    return y + b


def resblock_ref(x_nchw, w_oihw, bias):
    x = jnp.transpose(x_nchw, (0, 2, 3, 1))
    w = jnp.transpose(w_oihw, (2, 3, 1, 0))
    h = _conv_ref(x, w, bias)
    h = jnp.where(h >= 0, h, 0.01 * h)
    y = _conv_ref(h, w, bias) + x
    return jnp.transpose(y, (0, 3, 1, 2))


if __name__ == "__main__":
    # forward uses conv1 twice + residual => in_channel == out_channel (default 32)
    B, C, H, W = 2, 32, 16, 16

    key = jax.random.PRNGKey(0)
    kx, kw, kb = jax.random.split(key, 3)

    # Deterministic init mimicking nn.Conv2d defaults (kaiming-uniform bound).
    fan_in = C * 3 * 3
    bound = 1.0 / jnp.sqrt(fan_in)
    w_oihw = jax.random.uniform(kw, (C, C, 3, 3), jnp.float32, -bound, bound)
    bias = jax.random.uniform(kb, (C,), jnp.float32, -bound, bound)
    x = jax.random.normal(kx, (B, C, H, W), jnp.float32)

    out = jax.block_until_ready(resblock_forward(x, w_oihw, bias))
    ref = resblock_ref(x, w_oihw, bias)

    assert out.shape == (B, C, H, W)
    max_err = jnp.max(jnp.abs(out - ref))
    # bf16 MXU operands => ~1e-2-level error vs the f32 HIGHEST-precision ref.
    assert jnp.allclose(out, ref, atol=2e-2, rtol=2e-2), (
        f"max abs err = {max_err}")

    print("KERNEL_OK")
</pallas_src>

<mosaic_0001>
module attributes {stable_mosaic.version = 11 : i64} {
  func.func @resblock_kernel(%arg0: i32, %arg1: memref<1x32x256xf32, #tpu.memory_space<vmem>>, %arg2: memref<3x32x96xbf16, #tpu.memory_space<vmem>>, %arg3: memref<32x1xf32, #tpu.memory_space<vmem>>, %arg4: memref<32x256xbf16, #tpu.memory_space<vmem>>, %arg5: memref<32x256xbf16, #tpu.memory_space<vmem>>, %arg6: memref<1x32x256xf32, #tpu.memory_space<vmem>>, %arg7: memref<32x512xbf16, #tpu.memory_space<vmem>>) attributes {dimension_semantics = [#tpu.dimension_semantics<parallel>], iteration_bounds = array<i64: 2>, scalar_prefetch = 0 : i64, scratch_operands = 1 : i64, tpu.core_type = #tpu.core_type<tc>, window_params = [{transform_indices = @transform_0, window_bounds = array<i64: 1, 32, 256>}, {pipeline_mode = #tpu.pipeline_mode<synchronous>, transform_indices = @transform_1, window_bounds = array<i64: 3, 32, 96>}, {pipeline_mode = #tpu.pipeline_mode<synchronous>, transform_indices = @transform_2, window_bounds = array<i64: 32, 1>}, {pipeline_mode = #tpu.pipeline_mode<synchronous>, transform_indices = @transform_3, window_bounds = array<i64: 32, 256>}, {pipeline_mode = #tpu.pipeline_mode<synchronous>, transform_indices = @transform_4, window_bounds = array<i64: 32, 256>}, {transform_indices = @transform_5, window_bounds = array<i64: 1, 32, 256>}]} {
    %cst = arith.constant 0.000000e+00 : bf16
    %0 = vector.broadcast %cst : bf16 to vector<32x128xbf16>
    %c0 = arith.constant 0 : index
    %c0_0 = arith.constant 0 : index
    %1 = vector.load %arg7[%c0, %c0_0] : memref<32x512xbf16, #tpu.memory_space<vmem>>, vector<32x128xbf16>
    tpu.vector_store %arg7[%c0, %c0_0], %0 {strides = array<i32>} : memref<32x512xbf16, #tpu.memory_space<vmem>>, vector<32x128xbf16>,
    %cst_1 = arith.constant 0.000000e+00 : bf16
    %2 = vector.broadcast %cst_1 : bf16 to vector<32x128xbf16>
    %c0_2 = arith.constant 0 : index
    %c384 = arith.constant 384 : index
    %3 = vector.load %arg7[%c0_2, %c384] : memref<32x512xbf16, #tpu.memory_space<vmem>>, vector<32x128xbf16>
    tpu.vector_store %arg7[%c0_2, %c384], %2 {strides = array<i32>} : memref<32x512xbf16, #tpu.memory_space<vmem>>, vector<32x128xbf16>,
    %c0_3 = arith.constant 0 : index
    %c0_4 = arith.constant 0 : index
    %c0_5 = arith.constant 0 : index
    %4 = vector.load %arg2[%c0_3, %c0_4, %c0_5] : memref<3x32x96xbf16, #tpu.memory_space<vmem>>, vector<3x32x96xbf16>
    %c0_6 = arith.constant 0 : index
    %c0_7 = arith.constant 0 : index
    %5 = vector.load %arg3[%c0_6, %c0_7] : memref<32x1xf32, #tpu.memory_space<vmem>>, vector<32x1xf32>
    %c0_8 = arith.constant 0 : index
    %c0_9 = arith.constant 0 : index
    %6 = vector.load %arg4[%c0_8, %c0_9] : memref<32x256xbf16, #tpu.memory_space<vmem>>, vector<32x256xbf16>
    %c0_10 = arith.constant 0 : index
    %c0_11 = arith.constant 0 : index
    %7 = vector.load %arg5[%c0_10, %c0_11] : memref<32x256xbf16, #tpu.memory_space<vmem>>, vector<32x256xbf16>
    %c0_12 = arith.constant 0 : index
    %c0_13 = arith.constant 0 : index
    %c0_14 = arith.constant 0 : index
    %8 = vector.load %arg1[%c0_12, %c0_13, %c0_14] : memref<1x32x256xf32, #tpu.memory_space<vmem>>, vector<1x32x256xf32>
    %9 = vector.shape_cast %8 : vector<1x32x256xf32> to vector<32x256xf32>
    %10 = arith.truncf %9 : vector<32x256xf32> to vector<32x256xbf16>
    %c0_15 = arith.constant 0 : index
    %c128 = arith.constant 128 : index
    %11 = vector.load %arg7[%c0_15, %c128] : memref<32x512xbf16, #tpu.memory_space<vmem>>, vector<32x256xbf16>
    tpu.vector_store %arg7[%c0_15, %c128], %10 {strides = array<i32>} : memref<32x512xbf16, #tpu.memory_space<vmem>>, vector<32x256xbf16>,
    %c0_16 = arith.constant 0 : index
    %c111 = arith.constant 111 : index
    %12 = vector.load %arg7[%c0_16, %c111] : memref<32x512xbf16, #tpu.memory_space<vmem>>, vector<32x256xbf16>
    %13 = arith.mulf %12, %6 : vector<32x256xbf16>
    %c0_17 = arith.constant 0 : index
    %c112 = arith.constant 112 : index
    %14 = vector.load %arg7[%c0_17, %c112] : memref<32x512xbf16, #tpu.memory_space<vmem>>, vector<32x256xbf16>
    %c0_18 = arith.constant 0 : index
    %c113 = arith.constant 113 : index
    %15 = vector.load %arg7[%c0_18, %c113] : memref<32x512xbf16, #tpu.memory_space<vmem>>, vector<32x256xbf16>
    %16 = arith.mulf %15, %7 : vector<32x256xbf16>
    %17 = tpu.concatenate %13, %14, %16 in 0 : vector<32x256xbf16>, vector<32x256xbf16>, vector<32x256xbf16> -> vector<96x256xbf16>
    %18 = vector.extract_strided_slice %4 {offsets = [0, 0, 0], sizes = [1, 32, 96], strides = [1, 1, 1]} : vector<3x32x96xbf16> to vector<1x32x96xbf16>
    %19 = vector.shape_cast %18 : vector<1x32x96xbf16> to vector<32x96xbf16>
    %cst_19 = arith.constant dense<0.000000e+00> : vector<32x256xf32>
    %20 = tpu.matmul %19, %17, %cst_19 {dimension_numbers = #tpu.dot_dimension_numbers<[1], [0], [0], [1], [0, 0, 1, 1], [], []>} : vector<32x96xbf16>, vector<96x256xbf16>, vector<32x256xf32> -> vector<32x256xf32>
    %c0_20 = arith.constant 0 : index
    %c127 = arith.constant 127 : index
    %21 = vector.load %arg7[%c0_20, %c127] : memref<32x512xbf16, #tpu.memory_space<vmem>>, vector<32x256xbf16>
    %22 = arith.mulf %21, %6 : vector<32x256xbf16>
    %c0_21 = arith.constant 0 : index
    %c128_22 = arith.constant 128 : index
    %23 = vector.load %arg7[%c0_21, %c128_22] : memref<32x512xbf16, #tpu.memory_space<vmem>>, vector<32x256xbf16>
    %c0_23 = arith.constant 0 : index
    %c129 = arith.constant 129 : index
    %24 = vector.load %arg7[%c0_23, %c129] : memref<32x512xbf16, #tpu.memory_space<vmem>>, vector<32x256xbf16>
    %25 = arith.mulf %24, %7 : vector<32x256xbf16>
    %26 = tpu.concatenate %22, %23, %25 in 0 : vector<32x256xbf16>, vector<32x256xbf16>, vector<32x256xbf16> -> vector<96x256xbf16>
    %27 = vector.extract_strided_slice %4 {offsets = [1, 0, 0], sizes = [1, 32, 96], strides = [1, 1, 1]} : vector<3x32x96xbf16> to vector<1x32x96xbf16>
    %28 = vector.shape_cast %27 : vector<1x32x96xbf16> to vector<32x96xbf16>
    %cst_24 = arith.constant dense<0.000000e+00> : vector<32x256xf32>
    %29 = tpu.matmul %28, %26, %cst_24 {dimension_numbers = #tpu.dot_dimension_numbers<[1], [0], [0], [1], [0, 0, 1, 1], [], []>} : vector<32x96xbf16>, vector<96x256xbf16>, vector<32x256xf32> -> vector<32x256xf32>
    %30 = arith.addf %20, %29 : vector<32x256xf32>
    %c0_25 = arith.constant 0 : index
    %c143 = arith.constant 143 : index
    %31 = vector.load %arg7[%c0_25, %c143] : memref<32x512xbf16, #tpu.memory_space<vmem>>, vector<32x256xbf16>
    %32 = arith.mulf %31, %6 : vector<32x256xbf16>
    %c0_26 = arith.constant 0 : index
    %c144 = arith.constant 144 : index
    %33 = vector.load %arg7[%c0_26, %c144] : memref<32x512xbf16, #tpu.memory_space<vmem>>, vector<32x256xbf16>
    %c0_27 = arith.constant 0 : index
    %c145 = arith.constant 145 : index
    %34 = vector.load %arg7[%c0_27, %c145] : memref<32x512xbf16, #tpu.memory_space<vmem>>, vector<32x256xbf16>
    %35 = arith.mulf %34, %7 : vector<32x256xbf16>
    %36 = tpu.concatenate %32, %33, %35 in 0 : vector<32x256xbf16>, vector<32x256xbf16>, vector<32x256xbf16> -> vector<96x256xbf16>
    %37 = vector.extract_strided_slice %4 {offsets = [2, 0, 0], sizes = [1, 32, 96], strides = [1, 1, 1]} : vector<3x32x96xbf16> to vector<1x32x96xbf16>
    %38 = vector.shape_cast %37 : vector<1x32x96xbf16> to vector<32x96xbf16>
    %cst_28 = arith.constant dense<0.000000e+00> : vector<32x256xf32>
    %39 = tpu.matmul %38, %36, %cst_28 {dimension_numbers = #tpu.dot_dimension_numbers<[1], [0], [0], [1], [0, 0, 1, 1], [], []>} : vector<32x96xbf16>, vector<96x256xbf16>, vector<32x256xf32> -> vector<32x256xf32>
    %40 = arith.addf %30, %39 : vector<32x256xf32>
    %41 = vector.broadcast %5 : vector<32x1xf32> to vector<32x256xf32>
    %42 = arith.addf %40, %41 : vector<32x256xf32>
    %cst_29 = arith.constant 0.00999999977 : f32
    %43 = vector.broadcast %cst_29 : f32 to vector<32x256xf32>
    %44 = arith.mulf %43, %42 : vector<32x256xf32>
    %45 = arith.maximumf %42, %44 : vector<32x256xf32>
    %46 = arith.truncf %45 : vector<32x256xf32> to vector<32x256xbf16>
    %c0_30 = arith.constant 0 : index
    %c128_31 = arith.constant 128 : index
    %47 = vector.load %arg7[%c0_30, %c128_31] : memref<32x512xbf16, #tpu.memory_space<vmem>>, vector<32x256xbf16>
    tpu.vector_store %arg7[%c0_30, %c128_31], %46 {strides = array<i32>} : memref<32x512xbf16, #tpu.memory_space<vmem>>, vector<32x256xbf16>,
    %c0_32 = arith.constant 0 : index
    %c111_33 = arith.constant 111 : index
    %48 = vector.load %arg7[%c0_32, %c111_33] : memref<32x512xbf16, #tpu.memory_space<vmem>>, vector<32x256xbf16>
    %49 = arith.mulf %48, %6 : vector<32x256xbf16>
    %c0_34 = arith.constant 0 : index
    %c112_35 = arith.constant 112 : index
    %50 = vector.load %arg7[%c0_34, %c112_35] : memref<32x512xbf16, #tpu.memory_space<vmem>>, vector<32x256xbf16>
    %c0_36 = arith.constant 0 : index
    %c113_37 = arith.constant 113 : index
    %51 = vector.load %arg7[%c0_36, %c113_37] : memref<32x512xbf16, #tpu.memory_space<vmem>>, vector<32x256xbf16>
    %52 = arith.mulf %51, %7 : vector<32x256xbf16>
    %53 = tpu.concatenate %49, %50, %52 in 0 : vector<32x256xbf16>, vector<32x256xbf16>, vector<32x256xbf16> -> vector<96x256xbf16>
    %54 = vector.extract_strided_slice %4 {offsets = [0, 0, 0], sizes = [1, 32, 96], strides = [1, 1, 1]} : vector<3x32x96xbf16> to vector<1x32x96xbf16>
    %55 = vector.shape_cast %54 : vector<1x32x96xbf16> to vector<32x96xbf16>
    %cst_38 = arith.constant dense<0.000000e+00> : vector<32x256xf32>
    %56 = tpu.matmul %55, %53, %cst_38 {dimension_numbers = #tpu.dot_dimension_numbers<[1], [0], [0], [1], [0, 0, 1, 1], [], []>} : vector<32x96xbf16>, vector<96x256xbf16>, vector<32x256xf32> -> vector<32x256xf32>
    %c0_39 = arith.constant 0 : index
    %c127_40 = arith.constant 127 : index
    %57 = vector.load %arg7[%c0_39, %c127_40] : memref<32x512xbf16, #tpu.memory_space<vmem>>, vector<32x256xbf16>
    %58 = arith.mulf %57, %6 : vector<32x256xbf16>
    %c0_41 = arith.constant 0 : index
    %c128_42 = arith.constant 128 : index
    %59 = vector.load %arg7[%c0_41, %c128_42] : memref<32x512xbf16, #tpu.memory_space<vmem>>, vector<32x256xbf16>
    %c0_43 = arith.constant 0 : index
    %c129_44 = arith.constant 129 : index
    %60 = vector.load %arg7[%c0_43, %c129_44] : memref<32x512xbf16, #tpu.memory_space<vmem>>, vector<32x256xbf16>
    %61 = arith.mulf %60, %7 : vector<32x256xbf16>
    %62 = tpu.concatenate %58, %59, %61 in 0 : vector<32x256xbf16>, vector<32x256xbf16>, vector<32x256xbf16> -> vector<96x256xbf16>
    %63 = vector.extract_strided_slice %4 {offsets = [1, 0, 0], sizes = [1, 32, 96], strides = [1, 1, 1]} : vector<3x32x96xbf16> to vector<1x32x96xbf16>
    %64 = vector.shape_cast %63 : vector<1x32x96xbf16> to vector<32x96xbf16>
    %cst_45 = arith.constant dense<0.000000e+00> : vector<32x256xf32>
    %65 = tpu.matmul %64, %62, %cst_45 {dimension_numbers = #tpu.dot_dimension_numbers<[1], [0], [0], [1], [0, 0, 1, 1], [], []>} : vector<32x96xbf16>, vector<96x256xbf16>, vector<32x256xf32> -> vector<32x256xf32>
    %66 = arith.addf %56, %65 : vector<32x256xf32>
    %c0_46 = arith.constant 0 : index
    %c143_47 = arith.constant 143 : index
    %67 = vector.load %arg7[%c0_46, %c143_47] : memref<32x512xbf16, #tpu.memory_space<vmem>>, vector<32x256xbf16>
    %68 = arith.mulf %67, %6 : vector<32x256xbf16>
    %c0_48 = arith.constant 0 : index
    %c144_49 = arith.constant 144 : index
    %69 = vector.load %arg7[%c0_48, %c144_49] : memref<32x512xbf16, #tpu.memory_space<vmem>>, vector<32x256xbf16>
    %c0_50 = arith.constant 0 : index
    %c145_51 = arith.constant 145 : index
    %70 = vector.load %arg7[%c0_50, %c145_51] : memref<32x512xbf16, #tpu.memory_space<vmem>>, vector<32x256xbf16>
    %71 = arith.mulf %70, %7 : vector<32x256xbf16>
    %72 = tpu.concatenate %68, %69, %71 in 0 : vector<32x256xbf16>, vector<32x256xbf16>, vector<32x256xbf16> -> vector<96x256xbf16>
    %73 = vector.extract_strided_slice %4 {offsets = [2, 0, 0], sizes = [1, 32, 96], strides = [1, 1, 1]} : vector<3x32x96xbf16> to vector<1x32x96xbf16>
    %74 = vector.shape_cast %73 : vector<1x32x96xbf16> to vector<32x96xbf16>
    %cst_52 = arith.constant dense<0.000000e+00> : vector<32x256xf32>
    %75 = tpu.matmul %74, %72, %cst_52 {dimension_numbers = #tpu.dot_dimension_numbers<[1], [0], [0], [1], [0, 0, 1, 1], [], []>} : vector<32x96xbf16>, vector<96x256xbf16>, vector<32x256xf32> -> vector<32x256xf32>
    %76 = arith.addf %66, %75 : vector<32x256xf32>
    %77 = vector.broadcast %5 : vector<32x1xf32> to vector<32x256xf32>
    %78 = arith.addf %76, %77 : vector<32x256xf32>
    %79 = arith.addf %78, %9 : vector<32x256xf32>
    %c0_53 = arith.constant 0 : index
    %c0_54 = arith.constant 0 : index
    %c0_55 = arith.constant 0 : index
    %80 = vector.load %arg6[%c0_53, %c0_54, %c0_55] : memref<1x32x256xf32, #tpu.memory_space<vmem>>, vector<1x32x256xf32>
    %81 = vector.shape_cast %80 : vector<1x32x256xf32> to vector<32x256xf32>
    %82 = vector.shape_cast %79 : vector<32x256xf32> to vector<1x32x256xf32>
    tpu.vector_store %arg6[%c0_53, %c0_54, %c0_55], %82 {strides = array<i32>} : memref<1x32x256xf32, #tpu.memory_space<vmem>>, vector<1x32x256xf32>,
    return
  }
  func.func @transform_0(%arg0: i32) -> (i32, i32, i32) {
    %c0_i32 = arith.constant 0 : i32
    %c0_i32_0 = arith.constant 0 : i32
    %c0_i32_1 = arith.constant 0 : i32
    return %arg0, %c0_i32, %c0_i32_0 : i32, i32, i32
  }
  func.func @transform_1(%arg0: i32) -> (i32, i32, i32) {
    %c0_i32 = arith.constant 0 : i32
    %c0_i32_0 = arith.constant 0 : i32
    %c0_i32_1 = arith.constant 0 : i32
    %c0_i32_2 = arith.constant 0 : i32
    return %c0_i32, %c0_i32_0, %c0_i32_1 : i32, i32, i32
  }
  func.func @transform_2(%arg0: i32) -> (i32, i32) {
    %c0_i32 = arith.constant 0 : i32
    %c0_i32_0 = arith.constant 0 : i32
    %c0_i32_1 = arith.constant 0 : i32
    return %c0_i32, %c0_i32_0 : i32, i32
  }
  func.func @transform_3(%arg0: i32) -> (i32, i32) {
    %c0_i32 = arith.constant 0 : i32
    %c0_i32_0 = arith.constant 0 : i32
    %c0_i32_1 = arith.constant 0 : i32
    return %c0_i32, %c0_i32_0 : i32, i32
  }
  func.func @transform_4(%arg0: i32) -> (i32, i32) {
    %c0_i32 = arith.constant 0 : i32
    %c0_i32_0 = arith.constant 0 : i32
    %c0_i32_1 = arith.constant 0 : i32
    return %c0_i32, %c0_i32_0 : i32, i32
  }
  func.func @transform_5(%arg0: i32) -> (i32, i32, i32) {
    %c0_i32 = arith.constant 0 : i32
    %c0_i32_0 = arith.constant 0 : i32
    %c0_i32_1 = arith.constant 0 : i32
    return %arg0, %c0_i32, %c0_i32_0 : i32, i32, i32
  }
}

</mosaic_0001>

<bundles_post_ra>
// kernel: resblock_forward.1
= control target key start
LH: loop header
LB: loop body
LE: loop exit
PB: predicated region body
PF: predicated region fallthrough
CT: control target
= control target key end

     0   :  { %s2675_s18 = smov 0   ;;  %s4136_s0 = inlined_call_operand.vmem [shape: f32[2,32,256], index: 0, kind: input, shape index: {}]   ;;  %s4137_s1 = inlined_call_operand.vmem [shape: bf16[3,32,96], index: 1, kind: input, shape index: {}]   ;;  %s4138_s2 = inlined_call_operand.vmem [shape: f32[32,1], index: 2, kind: input, shape index: {}]   ;;  %s4139_s3 = inlined_call_operand.vmem [shape: bf16[32,256], index: 3, kind: input, shape index: {}]   ;;  %s4140_s4 = inlined_call_operand.vmem [shape: bf16[32,256], index: 4, kind: input, shape index: {}]   ;;  %s4141_s5 = inlined_call_operand.vmem [shape: f32[2,32,256], index: 5, kind: output, shape index: {}]  }
   0x1 LB: > { %s2249_s19 = sadd.s32 4294967295, %s2635_s18   ;;  %p2253_p0 = scmp.ge.s32.totalorder %s2635_s18, 1  ;;  %s2635_s18 = sphi %s2675_s18, %s15_s18  }
   0x2   : > { %p187_p1 = scmp.lt.s32.totalorder %s2635_s18, 3 }
   0x4   : > { %p188_p2 = pnand %p2253_p0, %p187_p1 }
   0x6   : > { %191 = sbr.rel (%p188_p2) target bundleno = 1171 (0x493), region = 40 }
   0xb   : > { %v252_v0 = vld [vmem:[%s4139_s3 + $0x10] sm:$0xff]  ;;  %v250_v1 = vld [vmem:[%s4139_s3] sm:$0xff]  ;;  %v253_v6 = vld [vmem:[%s4139_s3 + $0x18] sm:$0xff]  ;;  %p215_p3 = scmp.lt.s32.totalorder %s2249_s19, 1  ;;  %s2637_s7 = smov 111   ;;  %v2642_v53 = vmov 0  }
   0xc   : > { %v298_v2 = vunpack.c.l.bf16 %v252_v0  ;;  %v299_v3 = vunpack.c.h.bf16 %v252_v0  ;;  %v294_v4 = vunpack.c.l.bf16 %v250_v1  ;;  %v295_v5 = vunpack.c.h.bf16 %v250_v1  ;;  %v254_v7 = vld [vmem:[%s4140_s4] sm:$0xff]  ;;  %v251_v8 = vld [vmem:[%s4139_s3 + $0x8] sm:$0xff]  ;;  %s2638_s8 = smov 113   ;;  %v256_v23 = vld [vmem:[%s4140_s4 + $0x10] sm:$0xff]  ;;  %s2639_s17 = smov 1   ;;  %2613 = vset.pattern.permute.xlu2 %v2642_v53  ;;  %2614 = vset.pattern.permute.xlu0 %v2642_v53 }
   0xd   : > { %v363_v11 = vunpack.c.l.bf16 %v254_v7  ;;  %v364_v12 = vunpack.c.h.bf16 %v254_v7  ;;  %v300_v13 = vunpack.c.l.bf16 %v253_v6  ;;  %v255_v14 = vld [vmem:[%s4140_s4 + $0x8] sm:$0xff]  ;;  %s4321_s19 = smov (!%p215_p3, %s2249_s19), 1  ;;  %v301_v15 = vunpack.c.h.bf16 %v253_v6  ;;  %v257_v25 = vld [vmem:[%s4140_s4 + $0x18] sm:$0xff]  ;;  %s2640_s20 = smov 17   ;;  %226 = vst [vmem:[#allocation2] sm:$0xf] %v2642_v53  ;;  %2612 = vset.pattern.permute.xlu1 %v2642_v53 }
   0xe   : > { %v2698_v9 = vpack.i.bf16 %v299_v3, %v298_v2  ;;  %v2700_v10 = vpack.i.bf16 %v295_v5, %v294_v4  ;;  %v296_v16 = vunpack.c.l.bf16 %v251_v8  ;;  %v297_v17 = vunpack.c.h.bf16 %v251_v8  ;;  %s2436_s9 = sshll.u32 %s4321_s19, 6  ;;  %s2641_s21 = smov 127   ;;  %227 = vst [vmem:[#allocation2 + $0x10] sm:$0xf] %v2642_v53 }
   0xf   : > { %v2512_v18 = vpack.i.bf16 %v364_v12, %v363_v11  ;;  %v365_v19 = vunpack.c.l.bf16 %v255_v14  ;;  %v366_v20 = vunpack.c.h.bf16 %v255_v14  ;;  %v2711_v21 = vpack.i.bf16 %v301_v15, %v300_v13  ;;  %s2723_s14 = scalar_lea.vmem %s4136_s0, %s2436_s9  ;;  %228 = vst [vmem:[#allocation2 + $0x20] sm:$0xf] %v2642_v53  ;;  %s2643_s22 = smov 126  }
  0x10   : > { %2503 = vrot.lane.b32.xlu1 %v2698_v9, %s2637_s7  ;;  %2493 = vrot.lane.b32.xlu0 %v2700_v10, %s2637_s7  ;;  %v2713_v22 = vpack.i.bf16 %v297_v17, %v296_v16  ;;  %v367_v26 = vunpack.c.l.bf16 %v256_v23  ;;  %v368_v27 = vunpack.c.h.bf16 %v256_v23  ;;  %v262_v28 = vld [vmem:[%s2723_s14 + $0x20] sm:$0xff]  ;;  %v263_v29 = vld [vmem:[%s2723_s14 + $0x28] sm:$0xff]  ;;  %v369_v33 = vunpack.c.l.bf16 %v257_v25  ;;  %229 = vst [vmem:[#allocation2 + $0x30] sm:$0xf] %v2642_v53  ;;  %s2644_s23 = smov 15   ;;  %s4108_s15 = scalar_lea.vmem %s4141_s5, %s2436_s9 }
  0x11   : > { %2513 = vrot.lane.b32.xlu2 %v2512_v18, %s2638_s8  ;;  %v2517_v24 = vpack.i.bf16 %v366_v20, %v365_v19  ;;  %v264_v30 = vld [vmem:[%s2723_s14 + $0x30] sm:$0xff]  ;;  %v265_v31 = vld [vmem:[%s2723_s14 + $0x38] sm:$0xff]  ;;  %v2734_v32 = vpack.c.bf16 %v263_v29, %v262_v28  ;;  %v370_v34 = vunpack.c.h.bf16 %v257_v25  ;;  %v258_v38 = vld [vmem:[%s2723_s14] sm:$0xff]  ;;  %230 = vst [vmem:[#allocation2 + $0xc] sm:$0xf] %v2642_v53  ;;  %vm395_vm0 = vcmask 924672  }
  0x12   : > { %v2737_v35 = vpack.c.bf16 %v265_v31, %v264_v30  ;;  %v2527_v36 = vpack.i.bf16 %v368_v27, %v367_v26  ;;  %v259_v39 = vld [vmem:[%s2723_s14 + $0x8] sm:$0xff]  ;;  %v260_v40 = vld [vmem:[%s2723_s14 + $0x10] sm:$0xff]  ;;  %v261_v41 = vld [vmem:[%s2723_s14 + $0x18] sm:$0xff]  ;;  %231 = vst [vmem:[#allocation2 + $0x1c] sm:$0xf] %v2642_v53  ;;  %vm326_vm1 = vcmask 908288  }
  0x13   : > { %272 = vst [vmem:[#allocation2 + $0x24] sm:$0xff] %v2734_v32  ;;  %v2532_v37 = vpack.i.bf16 %v370_v34, %v369_v33  ;;  %v2751_v42 = vpack.c.bf16 %v259_v39, %v258_v38  ;;  %v2753_v43 = vpack.c.bf16 %v261_v41, %v260_v40  ;;  %vm637_vm2 = vcmask 7168  }
  0x14   : > { %273 = vst [vmem:[#allocation2 + $0x34] sm:$0xff] %v2737_v35  ;;  %v2260_v6 = vld [vmem:[#allocation2] sm:$0xf]  ;;  %vm930_vm3 = vcmask 138240   ;;  %vm496_vm4 = vcmask 1039360   ;;  %vm539_vm5 = vcmask 1031168  }
  0x15   : > { %270 = vst [vmem:[#allocation2 + $0x4] sm:$0xff] %v2751_v42  ;;  %v2445_v7 = vld [vmem:[#allocation2 + $0xc] sm:$0xf0]  ;;  %vm1015_vm6 = vcmask 121856   ;;  %vm839_vm7 = vcmask 785408  }
  0x16   : > { %271 = vst [vmem:[#allocation2 + $0x14] sm:$0xff] %v2753_v43  ;;  %v2272_v63 = vld [vmem:[#allocation2 + $0x20] sm:$0xf]  ;;  %v2261_v11 = vor.u32 %v2445_v7, %v2260_v6  ;;  %v2868_v6 = vunpack.c.h.bf16 %v2734_v32 }
  0x17   : > { %232 = vst [vmem:[#allocation2 + $0x2c] sm:$0xf] %v2642_v53  ;;  %v2448_v0 = vld [vmem:[#allocation2 + $0x2c] sm:$0xf0] }
  0x18   : > { %2508 = vrot.lane.b32.xlu1 %v2711_v21, %s2637_s7  ;;  %2498 = vrot.lane.b32.xlu0 %v2713_v22, %s2637_s7  ;;  %233 = vst [vmem:[#allocation2 + $0x3c] sm:$0xf] %v2642_v53  ;;  %v2273_v1 = vor.u32 %v2448_v0, %v2272_v63  ;;  %v2836_v53 = vunpack.c.l.bf16 %v2737_v35 }
  0x19   : > { %2518 = vrot.lane.b32.xlu2 %v2517_v24, %s2638_s8 }
  0x1a   : > { %v2292_v44 = vld [vmem:[#allocation2 + $0x24] sm:$0xf]  ;;  %v2452_v46 = vld [vmem:[#allocation2 + $0x28] sm:$0xf] }
  0x1b   : > { %v2453_v45 = vld [vmem:[#allocation2 + $0x30] sm:$0xf0]  ;;  %v2294_v47 = vld [vmem:[#allocation2 + $0x34] sm:$0xf0]  ;;  %v2447_v54 = vld [vmem:[#allocation2 + $0x24] sm:$0xf] }
  0x1c   : > { %v2293_v48 = vor.u32 %v2453_v45, %v2292_v44  ;;  %v2297_v49 = vor.u32 %v2452_v46, %v2294_v47  ;;  %v2284_v50 = vld [vmem:[#allocation2 + $0x4] sm:$0xf]  ;;  %v2274_v55 = vld [vmem:[#allocation2 + $0x30] sm:$0xf0]  ;;  %v2450_v60 = vld [vmem:[#allocation2 + $0x8] sm:$0xf] }
  0x1d   : > { %v2451_v51 = vld [vmem:[#allocation2 + $0x10] sm:$0xf0]  ;;  %v2277_v56 = vor.u32 %v2447_v54, %v2274_v55  ;;  %v2444_v57 = vld [vmem:[#allocation2 + $0x4] sm:$0xf]  ;;  %v2286_v61 = vld [vmem:[#allocation2 + $0x14] sm:$0xf0]  ;;  %v2839_v54 = vunpack.c.h.bf16 %v2737_v35 }
  0x1e   : > { %v2285_v52 = vor.u32 %v2451_v51, %v2284_v50  ;;  %v2262_v58 = vld [vmem:[#allocation2 + $0x10] sm:$0xf0]  ;;  %v2289_v62 = vor.u32 %v2450_v60, %v2286_v61  ;;  %v2280_v2 = vld [vmem:[#allocation2 + $0x28] sm:$0xf]  ;;  %v2449_v3 = vld [vmem:[#allocation2 + $0x34] sm:$0xf0] }
  0x1f   : > { %v2265_v59 = vor.u32 %v2444_v57, %v2262_v58  ;;  %v2281_v5 = vor.u32 %v2449_v3, %v2280_v2  ;;  %v2268_v8 = vld [vmem:[#allocation2 + $0x8] sm:$0xf]  ;;  %v2446_v12 = vld [vmem:[#allocation2 + $0x14] sm:$0xf0]  ;;  %v274_v17 = vld [vmem:[#allocation2] sm:$0xff] }
  0x20   : > { %2528 = vrot.lane.b32.xlu1 %v2527_v36, %s2639_s17  ;;  %2523 = vrot.lane.b32.xlu0 %v2527_v36, %s2638_s8  ;;  %v2269_v13 = vor.u32 %v2446_v12, %v2268_v8  ;;  %v278_v19 = vld [vmem:[#allocation2 + $0x20] sm:$0xff]  ;;  %v2785_v23 = vunpack.c.l.bf16 %v274_v17  ;;  %v276_v28 = vld [vmem:[#allocation2 + $0x10] sm:$0xff]  ;;  %v606_v39 = vld [vmem:[#allocation2 + $0x28] sm:$0xff]  }
  0x21   : > { %2533 = vrot.lane.b32.xlu2 %v2532_v37, %s2639_s17  ;;  %v2797_v27 = vunpack.c.l.bf16 %v278_v19  ;;  %v2799_v30 = vunpack.c.h.bf16 %v278_v19  ;;  %v2815_v41 = vunpack.c.l.bf16 %v276_v28  ;;  %v2817_v44 = vunpack.c.h.bf16 %v276_v28  ;;  %v280_v47 = vld [vmem:[#allocation2 + $0x30] sm:$0xff]  ;;  %v608_v51 = vld [vmem:[#allocation2 + $0x38] sm:$0xff]  }
  0x22   : > { %v2841_v55 = vunpack.c.l.bf16 %v606_v39  ;;  %v2847_v61 = vunpack.c.h.bf16 %v280_v47  ;;  %v2852_v63 = vunpack.c.h.bf16 %v608_v51  ;;  %v2854_v0 = vunpack.c.l.bf16 %v608_v51  ;;  %v1591_v35 = vld [vmem:[#allocation2 + $0x3c] sm:$0xf] }
  0x23   : > { %4208 = vst [vmem:[#allocation11_spill] sm:$0xff] %v2815_v41 }
  0x24   : > { %4209 = vst [vmem:[#allocation12_spill] sm:$0xff] %v2817_v44 }
  0x28   : > { %2543 = vrot.lane.b32.xlu1 %v2517_v24, %s2639_s17  ;;  %2538 = vrot.lane.b32.xlu0 %v2512_v18, %s2639_s17 }
  0x29   : > { %2548 = vrot.lane.b32.xlu2 %v2532_v37, %s2638_s8 }
  0x30   : > { %2558 = vrot.lane.b32.xlu1 %v2532_v37, %s2640_s20  ;;  %2553 = vrot.lane.b32.xlu0 %v2527_v36, %s2640_s20  ;;  %v2807_v36 = vld [vmem:[#allocation2 + $0x18] sm:$0xff]  }
  0x31   : > { %2563 = vrot.lane.b32.xlu2 %v2512_v18, %s2640_s20  ;;  %v2783_v18 = vld [vmem:[#allocation2 + $0x8] sm:$0xff]  }
  0x32   : > { %v2790_v25 = vunpack.c.l.bf16 %v2783_v18 }
  0x34   : > { %4203 = vst [vmem:[#allocation6_spill] sm:$0xff] %v2790_v25 }
  0x38   : > { %2568 = vrot.lane.b32.xlu0 %v2517_v24, %s2640_s20  ;;  %2573 = vrot.lane.b32.xlu1 %v2698_v9, %s2641_s21  ;;  %v2787_v24 = vunpack.c.h.bf16 %v274_v17 }
  0x39   : > { %2578 = vrot.lane.b32.xlu2 %v2711_v21, %s2641_s21 }
  0x3a   : > { %4202 = vst [vmem:[#allocation5_spill] sm:$0xff] %v2787_v24 }
  0x40   : > { %720 = vrot.lane.b32.xlu0 %v2293_v48, %s2641_s21  ;;  %722 = vrot.lane.b32.xlu1 %v2297_v49, %s2641_s21 }
  0x41   : > { %2583 = vrot.lane.b32.xlu2 %v2700_v10, %s2641_s21 }
  0x48   : > { %2588 = vrot.lane.b32.xlu0 %v2713_v22, %s2641_s21  ;;  %716 = vrot.lane.b32.xlu1 %v2285_v52, %s2641_s21  ;;  %v2833_v52 = vunpack.c.l.bf16 %v2807_v36 }
  0x49   : > { %718 = vrot.lane.b32.xlu2 %v2289_v62, %s2641_s21  ;;  %v2850_v62 = vunpack.c.l.bf16 %v2734_v32 }
  0x4a   : > { %4213 = vst [vmem:[#allocation16_spill] sm:$0xff] %v2833_v52 }
  0x50   : > { %492 = vrot.lane.b32.xlu1 %v2277_v56, %s2641_s21  ;;  %490 = vrot.lane.b32.xlu0 %v2273_v1, %s2641_s21  ;;  %v2843_v56 = vunpack.c.l.bf16 %v280_v47  ;;  %v2914_v47 = vunpack.c.l.bf16 %v2753_v43 }
  0x51   : > { %494 = vrot.lane.b32.xlu2 %v2281_v5, %s2641_s21 }
  0x58   : > { %486 = vrot.lane.b32.xlu1 %v2265_v59, %s2641_s21  ;;  %484 = vrot.lane.b32.xlu0 %v2261_v11, %s2641_s21 }
  0x59   : > { %488 = vrot.lane.b32.xlu2 %v2269_v13, %s2641_s21  ;;  %v1589_v13 = vld [vmem:[#allocation2 + $0x2c] sm:$0xf] }
  0x6b   : > { %v2514_v4 = vpop.permute.xlu2 %2513 }
  0x6c   : > { %v2779_v15 = vunpack.i.h.bf16 %v2514_v4  ;;  %v2781_v16 = vunpack.i.l.bf16 %v2514_v4 }
  0x6e   : > { %4200 = vst [vmem:[#allocation3_spill] sm:$0xff] %v2779_v15  ;;  %v2795_v26 = vsel %vm395_vm0, %v2781_v16, %v2779_v15  ;;  %v412_v37 = vmul.f32 %v2781_v16, %v2785_v23  ;;  %v414_v40 = vmul.f32 %v2779_v15, %v2790_v25 }
  0x6f   : > { %4201 = vst [vmem:[#allocation4_spill] sm:$0xff] %v2781_v16  ;;  %v413_v38 = vmul.f32 %v2795_v26, %v2787_v24 }
  0x70   : > { %4204 = vst [vmem:[#allocation7_spill] sm:$0xff] %v2795_v26  ;;  %v425_v58 = vpack.c.bf16 %v414_v40, %v414_v40 }
  0x71   : > { %v2845_v59 = vpack.c.bf16 %v413_v38, %v412_v37 }
  0x72   : > { %v2882_v17 = vunpack.c.l.b16 %v425_v58 }
  0x73   : > { %v2519_v14 = vpop.permute.xlu2 %2518 }
  0x74   : > { %v2826_v48 = vunpack.i.h.bf16 %v2519_v14  ;;  %v2828_v49 = vunpack.i.l.bf16 %v2519_v14  ;;  %v2880_v14 = vunpack.c.h.bf16 %v606_v39 }
  0x76   : > { %4211 = vst [vmem:[#allocation14_spill] sm:$0xff] %v2826_v48  ;;  %v2859_v1 = vsel %vm395_vm0, %v2828_v49, %v2826_v48  ;;  %v2878_v12 = vmul.f32 %v2826_v48, %v2833_v52  ;;  %v2889_v32 = vmul.f32 %v2828_v49, %v2815_v41 }
  0x77   : > { %4212 = vst [vmem:[#allocation15_spill] sm:$0xff] %v2828_v49  ;;  %v2902_v38 = vmul.f32 %v2859_v1, %v2817_v44 }
  0x78   : > { %4214 = vst [vmem:[#allocation17_spill] sm:$0xff] %v2859_v1 }
  0x7b   : > { %v2534_v20 = vpop.permute.xlu2 %2533 }
  0x7c   : > { %v2861_v2 = vunpack.i.h.bf16 %v2534_v20  ;;  %v2863_v3 = vunpack.i.l.bf16 %v2534_v20  ;;  %v2885_v20 = vunpack.c.l.bf16 %v1591_v35  ;;  %v2923_v35 = vunpack.c.h.bf16 %v2753_v43 }
  0x7e   : > { %4215 = vst [vmem:[#allocation18_spill] sm:$0xff] %v2863_v3  ;;  %v2907_v39 = vsel %vm637_vm2, %v2863_v3, %v2861_v2 }
  0x7f   : > { %4221 = vst [vmem:[#allocation24_spill] sm:$0xff] %v2907_v39 }
  0x82   : > { %v2504_v29 = vpop.permute.xlu1 %2503  ;;  %v2801_v31 = vpop.permute.xlu0 %2493 }
  0x83   : > { %4205 = vst [vmem:[#allocation8_spill] sm:$0xff] %v2801_v31  ;;  %v2803_v33 = vunpack.i.h.bf16 %v2504_v29  ;;  %v2805_v34 = vunpack.i.l.bf16 %v2504_v29  ;;  %v2549_v57 = vpop.permute.xlu2 %2548 }
  0x84   : > { %v2874_v11 = vunpack.i.h.bf16 %v2549_v57 }
  0x85   : > { %4206 = vst [vmem:[#allocation9_spill] sm:$0xff] %v2803_v33  ;;  %v2822_v45 = vsel %vm326_vm1, %v2805_v34, %v2803_v33  ;;  %v349_v46 = vmul.f32 %v2805_v34, %v2797_v27  ;;  %v351_v37 = vmul.f32 %v2803_v33, %v2841_v55 }
  0x86   : > { %4207 = vst [vmem:[#allocation10_spill] sm:$0xff] %v2805_v34  ;;  %v350_v50 = vmul.f32 %v2822_v45, %v2799_v30 }
  0x87   : > { %4210 = vst [vmem:[#allocation13_spill] sm:$0xff] %v2822_v45  ;;  %v360_v51 = vpack.c.bf16 %v351_v37, %v351_v37 }
  0x88   : > { %v359_v60 = vpack.c.bf16 %v350_v50, %v349_v46  ;;  %4219 = vst [vmem:[#allocation22_spill] sm:$0xff] %v2874_v11  ;;  %v2911_v46 = vunpack.c.l.bf16 %v1589_v13  ;;  %v423_v50 = vmul.f32 %v2874_v11, %v2854_v0  ;;  %v665_v13 = vmul.f32 %v2861_v2, %v2852_v63 }
  0x8a   : > { %v2509_v4 = vpop.permute.xlu1 %2508  ;;  %v2865_v5 = vpop.permute.xlu0 %2498  ;;  %v447_v33 = vunpack.c.h.b16 %v359_v60  ;;  %v446_v15 = vunpack.c.l.b16 %v359_v60 }
  0x8b   : > { %4216 = vst [vmem:[#allocation19_spill] sm:$0xff] %v2865_v5  ;;  %v2870_v7 = vunpack.i.h.bf16 %v2509_v4  ;;  %v2872_v8 = vunpack.i.l.bf16 %v2509_v4  ;;  %v2926_v4 = vunpack.c.l.bf16 %v2751_v42 }
  0x8d   : > { %4217 = vst [vmem:[#allocation20_spill] sm:$0xff] %v2870_v7  ;;  %v2894_v28 = vsel %vm326_vm1, %v2872_v8, %v2870_v7  ;;  %v352_v29 = vmul.f32 %v2872_v8, %v2843_v56  ;;  %v354_v58 = vmul.f32 %v2870_v7, %v2854_v0 }
  0x8e   : > { %4218 = vst [vmem:[#allocation21_spill] sm:$0xff] %v2872_v8  ;;  %v353_v40 = vmul.f32 %v2894_v28, %v2847_v61  ;;  %v664_v8 = vmul.f32 %v2907_v39, %v2839_v54 }
  0x8f   : > { %4220 = vst [vmem:[#allocation23_spill] sm:$0xff] %v2894_v28  ;;  %v663_v28 = vmul.f32 %v2863_v3, %v2836_v53  ;;  %v362_v45 = vpack.c.bf16 %v354_v58, %v354_v58 }
  0x90   : > { %v361_v19 = vpack.c.bf16 %v353_v40, %v352_v29  ;;  %v431_v29 = vpack.c.bf16 %v423_v50, %v423_v50  ;;  %v673_v40 = vpack.c.bf16 %v665_v13, %v665_v13  ;;  %v2957_v50 = vunpack.i.l.bf16 %v2549_v57 }
  0x91   : > { %v2944_v37 = vunpack.c.l.b16 %v362_v45  ;;  %v2966_v45 = vunpack.c.h.bf16 %v2751_v42  ;;  %v2983_v42 = vmul.f32 %v2861_v2, %v2885_v20 }
  0x92   : > { %v2529_v34 = vpop.permute.xlu1 %2528  ;;  %v2524_v7 = vpop.permute.xlu0 %2523  ;;  %v450_v43 = vunpack.c.h.b16 %v361_v19  ;;  %v449_v26 = vunpack.c.l.b16 %v361_v19  ;;  %v2955_v19 = vunpack.c.l.b16 %v360_v51  ;;  %4229 = vst [vmem:[#allocation32_spill] sm:$0xff] %v2957_v50  ;;  %v520_v13 = vunpack.c.l.b16 %v431_v29 }
  0x93   : > { %v2934_v16 = vunpack.i.h.bf16 %v2529_v34  ;;  %v2936_v48 = vunpack.i.l.bf16 %v2529_v34  ;;  %v2938_v1 = vunpack.i.h.bf16 %v2524_v7  ;;  %4226 = vst [vmem:[#allocation29_spill] sm:$0xff] %v2944_v37  ;;  %v2953_v34 = vpack.c.bf16 %v664_v8, %v663_v28 }
  0x94   : > { %v2940_v3 = vpack.c.b16 %v450_v43, %v447_v33  ;;  %v2942_v49 = vpack.c.b16 %v449_v26, %v446_v15  ;;  %4228 = vst [vmem:[#allocation31_spill] sm:$0xff] %v2955_v19  ;;  %v2969_v8 = vunpack.c.h.bf16 %v2783_v18  ;;  %v2973_v28 = vunpack.i.l.bf16 %v2524_v7 }
  0x95   : > { %4222 = vst [vmem:[#allocation25_spill] sm:$0xff] %v2936_v48  ;;  %v2949_v58 = vsel %vm637_vm2, %v2936_v48, %v2934_v16  ;;  %v660_v60 = vmul.f32 %v2936_v48, %v2850_v62  ;;  %v662_v26 = vmul.f32 %v2934_v16, %v2880_v14  ;;  %v420_v33 = vmul.f32 %v2938_v1, %v2841_v55 }
  0x96   : > { %4223 = vst [vmem:[#allocation26_spill] sm:$0xff] %v2938_v1  ;;  %v661_v15 = vmul.f32 %v2949_v58, %v2868_v6  ;;  %v745_v39 = vunpack.c.l.b16 %v673_v40  ;;  %v743_v48 = vunpack.c.l.b16 %v2953_v34  ;;  %v2988_v18 = vsel %vm395_vm0, %v2957_v50, %v2874_v11 }
  0x97   : > { %4224 = vst [vmem:[#allocation27_spill] sm:$0xff] %v2940_v3  ;;  %v671_v51 = vpack.c.bf16 %v662_v26, %v662_v26  ;;  %v429_v43 = vpack.c.bf16 %v420_v33, %v420_v33  ;;  %v3002_v2 = vsel %vm395_vm0, %v2973_v28, %v2938_v1  ;;  %v4238_v1 = vpack.c.bf16 %v2878_v12, %v2878_v12 }
  0x98   : > { %4225 = vst [vmem:[#allocation28_spill] sm:$0xff] %v2942_v49  ;;  %v2979_v49 = vunpack.c.h.bf16 %v2807_v36  ;;  %v419_v12 = vmul.f32 %v3002_v2, %v2799_v30 }
  0x99   : > { %4227 = vst [vmem:[#allocation30_spill] sm:$0xff] %v2949_v58  ;;  %v2975_v58 = vpack.c.bf16 %v661_v15, %v660_v60  ;;  %v742_v26 = vunpack.c.l.b16 %v671_v51  ;;  %v517_v60 = vunpack.c.l.b16 %v429_v43 }
  0x9a   : > { %4230 = vst [vmem:[#allocation33_spill] sm:$0xff] %v2969_v8  ;;  %v2544_v7 = vpop.permute.xlu1 %2543  ;;  %v2539_v29 = vpop.permute.xlu0 %2538 }
  0x9b   : > { %4231 = vst [vmem:[#allocation34_spill] sm:$0xff] %v2973_v28  ;;  %v740_v40 = vunpack.c.l.b16 %v2975_v58  ;;  %v2991_v15 = vunpack.i.h.bf16 %v2544_v7  ;;  %v2993_v33 = vunpack.i.l.bf16 %v2544_v7  ;;  %v2995_v36 = vunpack.i.h.bf16 %v2539_v29 }
  0x9c   : > { %4232 = vst [vmem:[#allocation35_spill] sm:$0xff] %v2988_v18  ;;  %v2997_v57 = vunpack.i.l.bf16 %v2539_v29  ;;  %v751_v11 = vpack.c.b16 %v745_v39, %v742_v26  ;;  %v526_v19 = vpack.c.b16 %v520_v13, %v517_v60  ;;  %v421_v60 = vmul.f32 %v2957_v50, %v2843_v56 }
  0x9d   : > { %4233 = vst [vmem:[#allocation36_spill] sm:$0xff] %v2993_v33  ;;  %v749_v37 = vpack.c.b16 %v743_v48, %v740_v40  ;;  %v3007_v51 = vsel %vm637_vm2, %v2993_v33, %v2991_v15  ;;  %v657_v43 = vmul.f32 %v2993_v33, %v2914_v47  ;;  %v656_v13 = vmul.f32 %v2995_v36, %v2969_v8 }
  0x9e   : > { %4234 = vst [vmem:[#allocation37_spill] sm:$0xff] %v2997_v57  ;;  %v3014_v7 = vsel %vm637_vm2, %v2997_v57, %v2995_v36  ;;  %v654_v29 = vmul.f32 %v2997_v57, %v2926_v4  ;;  %v658_v39 = vmul.f32 %v3007_v51, %v2923_v35  ;;  %762 = vrot.lane.b32.xlu0 %v751_v11, %s2643_s22 }
  0x9f   : > { %4235 = vst [vmem:[#allocation38_spill] sm:$0xff] %v3002_v2  ;;  %v655_v48 = vmul.f32 %v3014_v7, %v2966_v45  ;;  %537 = vrot.lane.b32.xlu2 %v526_v19, %s2643_s22  ;;  %758 = vrot.lane.b32.xlu1 %v749_v37, %s2643_s22  ;;  %v659_v40 = vmul.f32 %v2991_v15, %v2979_v49  ;;  %v2564_v37 = vpop.permute.xlu2 %2563 }
  0xa0   : > { %4236 = vst [vmem:[#allocation39_spill] sm:$0xff] %v3007_v51  ;;  %v3037_v11 = vpack.c.bf16 %v2902_v38, %v2889_v32  ;;  %v422_v19 = vmul.f32 %v2988_v18, %v2847_v61  ;;  %v667_v26 = vpack.c.bf16 %v656_v13, %v656_v13  ;;  %v3043_v50 = vpack.c.bf16 %v658_v39, %v657_v43  ;;  %v1585_v43 = vld [vmem:[#allocation2 + $0xc] sm:$0xf] }
  0xa1   : > { %4237 = vst [vmem:[#allocation40_spill] sm:$0xff] %v3014_v7  ;;  %v514_v7 = vunpack.c.l.b16 %v4238_v1  ;;  %v3041_v57 = vpack.c.bf16 %v655_v48, %v654_v29  ;;  %v418_v51 = vmul.f32 %v2973_v28, %v2797_v27  ;;  %v669_v1 = vpack.c.bf16 %v659_v40, %v659_v40  ;;  %v1587_v40 = vld [vmem:[#allocation2 + $0x1c] sm:$0xf] }
  0xa2   : > { %v1612_v32 = vmul.f32 %v2934_v16, %v2911_v46  ;;  %v2559_v38 = vpop.permute.xlu1 %2558  ;;  %v2554_v33 = vpop.permute.xlu0 %2553  ;;  %v736_v3 = vunpack.c.l.b16 %v667_v26  ;;  %v737_v29 = vunpack.c.l.b16 %v3043_v50  ;;  %v1623_v39 = vpack.c.bf16 %v2983_v42, %v2983_v42 }
  0xa3   : > { %v734_v13 = vunpack.c.l.b16 %v3041_v57  ;;  %v2561_v48 = vunpack.i.h.bf16 %v2559_v38  ;;  %v2556_v28 = vunpack.i.h.bf16 %v2554_v33  ;;  %v523_v18 = vpack.c.b16 %v514_v7, %v2882_v17 }
  0xa4   : > { %v3056_v2 = vunpack.i.h.bf16 %v2564_v37  ;;  %v739_v31 = vunpack.c.l.b16 %v669_v1  ;;  %v430_v5 = vpack.c.bf16 %v422_v19, %v421_v60  ;;  %v1621_v52 = vpack.c.bf16 %v1612_v32, %v1612_v32 }
  0xa5   : > { %v746_v16 = vpack.c.b16 %v737_v29, %v734_v13  ;;  %v3058_v26 = vunpack.i.l.bf16 %v2554_v33  ;;  %v428_v25 = vpack.c.bf16 %v419_v12, %v418_v51  ;;  %v3060_v44 = vunpack.c.l.bf16 %v1585_v43 }
  0xa6   : > { %v748_v41 = vpack.c.b16 %v739_v31, %v736_v3  ;;  %v1093_v42 = vmul.f32 %v2556_v28, %v2880_v14  ;;  %v3064_v24 = vunpack.c.l.bf16 %v1587_v40  ;;  %v3066_v17 = vunpack.c.l.b16 %v1623_v39 }
  0xa7   : > { %4239 = vst [vmem:[#allocation41_spill] sm:$0xff] %v3058_v26  ;;  %531 = vrot.lane.b32.xlu2 %v523_v18, %s2643_s22  ;;  %752 = vrot.lane.b32.xlu1 %v746_v16, %s2643_s22  ;;  %v1096_v7 = vmul.f32 %v2561_v48, %v2852_v63  ;;  %v1087_v33 = vmul.f32 %v3056_v2, %v2969_v8  ;;  %v3072_v60 = vunpack.c.l.b16 %v1621_v52  ;;  %v3075_v31 = vunpack.i.l.bf16 %v2559_v38 }
  0xa8   : > { %v1942_v51 = vmul.f32 %v2556_v28, %v2911_v46  ;;  %756 = vrot.lane.b32.xlu0 %v748_v41, %s2643_s22  ;;  %v1102_v3 = vpack.c.bf16 %v1093_v42, %v1093_v42  ;;  %v519_v18 = vunpack.c.h.b16 %v430_v5  ;;  %v1945_v19 = vmul.f32 %v2561_v48, %v2885_v20 }
  0xa9   : > { %4240 = vst [vmem:[#allocation42_spill] sm:$0xff] %v3075_v31  ;;  %v3081_v12 = vsel %vm930_vm3, %v3058_v26, %v2556_v28  ;;  %v1104_v1 = vpack.c.bf16 %v1096_v7, %v1096_v7  ;;  %v516_v32 = vunpack.c.h.b16 %v428_v25  ;;  %v515_v29 = vunpack.c.l.b16 %v428_v25 }
  0xaa   : > { %4241 = vst [vmem:[#allocation43_spill] sm:$0xff] %v3081_v12  ;;  %v2569_v13 = vpop.permute.xlu0 %2568  ;;  %v518_v43 = vunpack.c.l.b16 %v430_v5  ;;  %v1189_v38 = vunpack.c.l.b16 %v1102_v3  ;;  %v1951_v39 = vpack.c.bf16 %v1942_v51, %v1942_v51  ;;  %v3085_v40 = vunpack.i.l.bf16 %v2564_v37 }
  0xab   : > { %v2571_v41 = vunpack.i.h.bf16 %v2569_v13  ;;  %v1192_v16 = vunpack.c.l.b16 %v1104_v1  ;;  %v1098_v42 = vpack.c.bf16 %v1087_v33, %v1087_v33  ;;  %v3089_v8 = vsel %vm930_vm3, %v3075_v31, %v2561_v48 }
  0xac   : > { %4242 = vst [vmem:[#allocation44_spill] sm:$0xff] %v3085_v40  ;;  %v1091_v28 = vmul.f32 %v3058_v26, %v2850_v62  ;;  %v1092_v7 = vmul.f32 %v3081_v12, %v2868_v6  ;;  %v1953_v52 = vpack.c.bf16 %v1945_v19, %v1945_v19  ;;  %v525_v5 = vpack.c.b16 %v519_v18, %v516_v32 }
  0xad   : > { %4243 = vst [vmem:[#allocation45_spill] sm:$0xff] %v3089_v8  ;;  %v1198_v25 = vpack.c.b16 %v1192_v16, %v1189_v38  ;;  %v1090_v51 = vmul.f32 %v2571_v41, %v2979_v49  ;;  %v1606_v37 = vmul.f32 %v2995_v36, %v3060_v44  ;;  %v1094_v33 = vmul.f32 %v3075_v31, %v2836_v53  ;;  %v2579_v38 = vpop.permute.xlu2 %2578 }
  0xae   : > { %v524_v3 = vpack.c.b16 %v518_v43, %v515_v29  ;;  %v3100_v48 = vunpack.c.l.b16 %v1951_v39  ;;  %v3102_v1 = vunpack.c.l.b16 %v1953_v52  ;;  %v1095_v26 = vmul.f32 %v3089_v8, %v2839_v54  ;;  %v2574_v39 = vpop.permute.xlu1 %2573 }
  0xaf   : > { %1209 = vrot.lane.b32.xlu2 %v1198_v25, %s2643_s22  ;;  %535 = vrot.lane.b32.xlu1 %v525_v5, %s2643_s22  ;;  %v1100_v18 = vpack.c.bf16 %v1090_v51, %v1090_v51  ;;  %v1183_v19 = vunpack.c.l.b16 %v1098_v42  ;;  %v1609_v36 = vmul.f32 %v2991_v15, %v3064_v24  ;;  %v3113_v32 = vsel %vm930_vm3, %v3085_v40, %v3056_v2 }
  0xb0   : > { %4244 = vst [vmem:[#allocation46_spill] sm:$0xff] %v3113_v32  ;;  %533 = vrot.lane.b32.xlu0 %v524_v3, %s2643_s22  ;;  %v512_v52 = vunpack.c.l.b16 %v3037_v11  ;;  %v513_v29 = vunpack.c.h.b16 %v3037_v11  ;;  %v1101_v43 = vpack.c.bf16 %v1092_v7, %v1091_v28  ;;  %v3118_v16 = vunpack.i.l.bf16 %v2569_v13 }
  0xb1   : > { %v1186_v42 = vunpack.c.l.b16 %v1100_v18  ;;  %v3120_v25 = vunpack.i.h.bf16 %v2579_v38  ;;  %v1617_v15 = vpack.c.bf16 %v1606_v37, %v1606_v37  ;;  %v3122_v5 = vunpack.i.l.bf16 %v2579_v38 }
  0xb2   : > { %v3124_v51 = vunpack.i.h.bf16 %v2574_v39  ;;  %v3126_v12 = vunpack.i.l.bf16 %v2574_v39  ;;  %v1103_v11 = vpack.c.bf16 %v1095_v26, %v1094_v33  ;;  %v1619_v28 = vpack.c.bf16 %v1609_v36, %v1609_v36 }
  0xb3   : > { %4245 = vst [vmem:[#allocation47_spill] sm:$0xff] %v3120_v25  ;;  %v1195_v8 = vpack.c.b16 %v1186_v42, %v1183_v19  ;;  %v1085_v13 = vmul.f32 %v3085_v40, %v2926_v4  ;;  %v4249_v7 = vunpack.c.l.b16 %v2845_v59  ;;  %v4250_v37 = vunpack.c.h.b16 %v2845_v59 }
  0xb4   : > { %4246 = vst [vmem:[#allocation48_spill] sm:$0xff] %v3122_v5  ;;  %v744_v31 = vunpack.c.h.b16 %v2953_v34  ;;  %v1086_v39 = vmul.f32 %v3113_v32, %v2966_v45  ;;  %v3141_v19 = vsel %vm930_vm3, %v3118_v16, %v2571_v41  ;;  %v3143_v26 = vunpack.c.l.b16 %v1617_v15 }
  0xb5   : > { %4247 = vst [vmem:[#allocation49_spill] sm:$0xff] %v3124_v51  ;;  %v521_v18 = vpack.c.b16 %v512_v52, %v4249_v7  ;;  %v522_v38 = vpack.c.b16 %v513_v29, %v4250_v37  ;;  %v3145_v33 = vunpack.c.l.b16 %v1619_v28  ;;  %v3150_v36 = vsel %vm496_vm4, %v3122_v5, %v3120_v25 }
  0xb6   : > { %4248 = vst [vmem:[#allocation50_spill] sm:$0xff] %v3126_v12  ;;  %v3155_v59 = vsel %vm496_vm4, %v3126_v12, %v3124_v51  ;;  %v1936_v34 = vmul.f32 %v3056_v2, %v3060_v44  ;;  %v1939_v52 = vmul.f32 %v2571_v41, %v3064_v24  ;;  %v741_v29 = vunpack.c.h.b16 %v2975_v58 }
  0xb7   : > { %4251 = vst [vmem:[#allocation51_spill] sm:$0xff] %v3141_v19  ;;  %1203 = vrot.lane.b32.xlu2 %v1195_v8, %s2643_s22  ;;  %529 = vrot.lane.b32.xlu1 %v522_v38, %s2643_s22  ;;  %v1188_v42 = vunpack.c.h.b16 %v1101_v43  ;;  %v1191_v15 = vunpack.c.h.b16 %v1103_v11  ;;  %v1088_v7 = vmul.f32 %v3118_v16, %v2914_v47  ;;  %v1089_v37 = vmul.f32 %v3141_v19, %v2923_v35 }
  0xb8   : > { %4252 = vst [vmem:[#allocation52_spill] sm:$0xff] %v3150_v36  ;;  %527 = vrot.lane.b32.xlu0 %v521_v18, %s2643_s22  ;;  %v1947_v2 = vpack.c.bf16 %v1936_v34, %v1936_v34  ;;  %v1949_v41 = vpack.c.bf16 %v1939_v52, %v1939_v52  ;;  %v586_v8 = vmul.f32 %v3122_v5, %v2843_v56  ;;  %v1187_v3 = vunpack.c.l.b16 %v1101_v43  ;;  %v4267_v5 = vld [vmem:[#allocation31_spill] sm:$0xff] }
  0xb9   : > { %4253 = vst [vmem:[#allocation53_spill] sm:$0xff] %v3155_v59  ;;  %v587_v58 = vmul.f32 %v3150_v36, %v2847_v61  ;;  %v583_v38 = vmul.f32 %v3126_v12, %v2797_v27  ;;  %v584_v28 = vmul.f32 %v3155_v59, %v2799_v30  ;;  %v1190_v32 = vunpack.c.l.b16 %v1103_v11 }
  0xba   : > { %v3178_v40 = vunpack.c.l.b16 %v1947_v2  ;;  %v3180_v19 = vunpack.c.l.b16 %v1949_v41  ;;  %v1097_v18 = vpack.c.bf16 %v1086_v39, %v1085_v13  ;;  %v750_v34 = vpack.c.b16 %v744_v31, %v741_v29 }
  0xbb   : > { %v585_v56 = vmul.f32 %v3124_v51, %v2841_v55  ;;  %v588_v61 = vmul.f32 %v3120_v25, %v2854_v0  ;;  %v1197_v52 = vpack.c.b16 %v1191_v15, %v1188_v42  ;;  %v1099_v12 = vpack.c.bf16 %v1089_v37, %v1088_v7 }
  0xbc   : > { %v593_v30 = vpack.c.bf16 %v584_v28, %v583_v38  ;;  %v595_v43 = vpack.c.bf16 %v587_v58, %v586_v8  ;;  %v1196_v11 = vpack.c.b16 %v1190_v32, %v1187_v3  ;;  %v1182_v0 = vunpack.c.h.b16 %v1097_v18 }
  0xbd   : > { %v594_v2 = vpack.c.bf16 %v585_v56, %v585_v56  ;;  %v596_v59 = vpack.c.bf16 %v588_v61, %v588_v61  ;;  %v735_v15 = vunpack.c.h.b16 %v3041_v57  ;;  %v738_v32 = vunpack.c.h.b16 %v3043_v50  ;;  %v2336_v50 = vld [vmem:[#allocation2 + $0x24] sm:$0xf]  ;;  %v2458_v57 = vld [vmem:[#allocation2 + $0x30] sm:$0xf0]  ;;  %v2584_v56 = vpop.permute.xlu2 %2583  ;;  %v2457_v61 = vld [vmem:[#allocation2 + $0x28] sm:$0xf] }
  0xbe   : > { %v689_v31 = vunpack.c.h.b16 %v593_v30  ;;  %v692_v13 = vunpack.c.h.b16 %v595_v43  ;;  %v688_v55 = vunpack.c.l.b16 %v593_v30  ;;  %v691_v39 = vunpack.c.l.b16 %v595_v43 }
  0xbf   : > { %760 = vrot.lane.b32.xlu2 %v750_v34, %s2643_s22  ;;  %1207 = vrot.lane.b32.xlu1 %v1197_v52, %s2643_s22  ;;  %v3191_v29 = vunpack.c.l.b16 %v594_v2  ;;  %v3193_v42 = vunpack.c.l.b16 %v596_v59  ;;  %v1185_v3 = vunpack.c.h.b16 %v1099_v12  ;;  %v1181_v7 = vunpack.c.l.b16 %v1097_v18  ;;  %v2459_v18 = vld [vmem:[#allocation2 + $0x38] sm:$0xf0]  ;;  %v2338_v52 = vld [vmem:[#allocation2 + $0x34] sm:$0xf0] }
  0xc0   : > { %1205 = vrot.lane.b32.xlu0 %v1196_v11, %s2643_s22  ;;  %v3197_v28 = vpack.c.b16 %v692_v13, %v689_v31  ;;  %v1184_v37 = vunpack.c.l.b16 %v1099_v12  ;;  %v3199_v41 = vpack.c.b16 %v691_v39, %v688_v55  ;;  %v747_v58 = vpack.c.b16 %v738_v32, %v735_v15  ;;  %v2344_v12 = vld [vmem:[#allocation2 + $0x2c] sm:$0xf]  ;;  %v2454_v11 = vld [vmem:[#allocation2 + $0x8] sm:$0xf]  ;;  %v2326_v2 = vld [vmem:[#allocation2 + $0x14] sm:$0xf0]  ;;  %v723_v39 = vpop.permute.xlu1 %722 }
  0xc1   : > { %v699_v8 = vpack.c.b16 %v3193_v42, %v3191_v29  ;;  %v1194_v38 = vpack.c.b16 %v1185_v3, %v1182_v0  ;;  %v2337_v59 = vor.u32 %v2458_v57, %v2336_v50  ;;  %v2345_v30 = vor.u32 %v2459_v18, %v2344_v12  ;;  %v2324_v31 = vld [vmem:[#allocation2 + $0x4] sm:$0xf]  ;;  %v2455_v13 = vld [vmem:[#allocation2 + $0x10] sm:$0xf0]  ;;  %v721_v0 = vpop.permute.xlu0 %720  ;;  %v2456_v15 = vld [vmem:[#allocation2 + $0x18] sm:$0xf0] }
  0xc2   : > { %v1193_v34 = vpack.c.b16 %v1184_v37, %v1181_v7  ;;  %v2341_v43 = vor.u32 %v2457_v61, %v2338_v52  ;;  %v2329_v55 = vor.u32 %v2454_v11, %v2326_v2  ;;  %v725_v32 = vsel %vm496_vm4, %v721_v0, %v723_v39  ;;  %v4254_v61 = vld [vmem:[#allocation5_spill] sm:$0xff]  ;;  %v4256_v11 = vld [vmem:[#allocation12_spill] sm:$0xff] }
  0xc7   : > { %754 = vrot.lane.b32.xlu2 %v747_v58, %s2643_s22  ;;  %1201 = vrot.lane.b32.xlu1 %v1194_v38, %s2643_s22  ;;  %v3219_v58 = vunpack.i.h.bf16 %v2584_v56  ;;  %v3221_v38 = vunpack.i.l.bf16 %v2584_v56 }
  0xc8   : > { %1199 = vrot.lane.b32.xlu0 %v1193_v34, %s2643_s22  ;;  %v717_v50 = vpop.permute.xlu1 %716 }
  0xc9   : > { %v2589_v37 = vpop.permute.xlu0 %2588  ;;  %v3230_v57 = vsel %vm496_vm4, %v3221_v38, %v3219_v58  ;;  %v577_v56 = vmul.f32 %v3221_v38, %v2785_v23 }
  0xca   : > { %v3223_v34 = vunpack.i.h.bf16 %v2589_v37  ;;  %v578_v52 = vmul.f32 %v3230_v57, %v4254_v61 }
  0xcf   : > { %1163 = vrot.lane.b32.xlu2 %v2337_v59, %s2641_s21  ;;  %2598 = vrot.lane.b32.xlu1 %v2711_v21, %s2644_s23  ;;  %v719_v21 = vpop.permute.xlu2 %718 }
  0xd0   : > { %2593 = vrot.lane.b32.xlu0 %v2698_v9, %s2644_s23  ;;  %v2325_v9 = vor.u32 %v2455_v13, %v2324_v31  ;;  %v724_v12 = vsel %vm496_vm4, %v717_v50, %v719_v21  ;;  %v589_v31 = vpack.c.bf16 %v578_v52, %v577_v56 }
  0xd7   : > { %2603 = vrot.lane.b32.xlu2 %v2700_v10, %s2644_s23  ;;  %1167 = vrot.lane.b32.xlu1 %v2345_v30, %s2641_s21  ;;  %v2332_v10 = vld [vmem:[#allocation2 + $0xc] sm:$0xf]  ;;  %v495_v7 = vpop.permute.xlu2 %494  ;;  %v4255_v30 = vld [vmem:[#allocation11_spill] sm:$0xff] }
  0xd8   : > { %1165 = vrot.lane.b32.xlu0 %v2341_v43, %s2641_s21  ;;  %v2333_v3 = vor.u32 %v2456_v15, %v2332_v10  ;;  %v4257_v15 = vld [vmem:[#allocation6_spill] sm:$0xff] }
  0xdf   : > { %1159 = vrot.lane.b32.xlu2 %v2329_v55, %s2641_s21  ;;  %1157 = vrot.lane.b32.xlu1 %v2325_v9, %s2641_s21  ;;  %v489_v18 = vpop.permute.xlu2 %488  ;;  %v683_v9 = vunpack.c.h.b16 %v589_v31 }
  0xe0   : > { %2608 = vrot.lane.b32.xlu0 %v2713_v22, %s2644_s23  ;;  %v3225_v22 = vunpack.i.l.bf16 %v2589_v37 }
  0xe2   : > { %v3235_v59 = vsel %vm496_vm4, %v3225_v22, %v3223_v34  ;;  %v580_v43 = vmul.f32 %v3225_v22, %v4255_v30 }
  0xe3   : > { %v581_v2 = vmul.f32 %v3235_v59, %v4256_v11 }
  0xe5   : > { %v591_v13 = vpack.c.bf16 %v581_v2, %v580_v43  ;;  %v493_v43 = vpop.permute.xlu1 %492 }
  0xe7   : > { %798 = vrot.lane.b32.xlu2 %v725_v32, %s2639_s17  ;;  %796 = vrot.lane.b32.xlu1 %v721_v0, %s2639_s17  ;;  %v686_v0 = vunpack.c.h.b16 %v591_v13  ;;  %v685_v10 = vunpack.c.l.b16 %v591_v13  ;;  %v579_v32 = vmul.f32 %v3219_v58, %v4257_v15 }
  0xe8   : > { %1161 = vrot.lane.b32.xlu0 %v2333_v3, %s2641_s21  ;;  %v4258_v3 = vld [vmem:[#allocation16_spill] sm:$0xff] }
  0xe9   : > { %v582_v37 = vmul.f32 %v3223_v34, %v4258_v3 }
  0xeb   : > { %v592_v52 = vpack.c.bf16 %v582_v37, %v582_v37 }
  0xed   : > { %v687_v2 = vunpack.c.l.b16 %v592_v52 }
  0xef   : > { %792 = vrot.lane.b32.xlu2 %v724_v12, %s2639_s17  ;;  %790 = vrot.lane.b32.xlu1 %v717_v50, %s2639_s17  ;;  %v491_v50 = vpop.permute.xlu0 %490  ;;  %v695_v12 = vpack.c.b16 %v686_v0, %v683_v9 }
  0xf0   : > { %800 = vrot.lane.b32.xlu0 %v723_v39, %s2639_s17  ;;  %v682_v39 = vunpack.c.l.b16 %v589_v31  ;;  %v500_v31 = vsel %vm496_vm4, %v493_v43, %v495_v7  ;;  %v499_v9 = vsel %vm496_vm4, %v491_v50, %v493_v43 }
  0xf2   : > { %v694_v56 = vpack.c.b16 %v685_v10, %v682_v39  ;;  %v487_v39 = vpop.permute.xlu1 %486 }
  0xf3   : > { %v498_v29 = vsel %vm496_vm4, %v487_v39, %v489_v18 }
  0xf7   : > { %786 = vrot.lane.b32.xlu2 %v3197_v28, %s2639_s17  ;;  %784 = vrot.lane.b32.xlu1 %v3199_v41, %s2639_s17  ;;  %v590_v28 = vpack.c.bf16 %v579_v32, %v579_v32  ;;  %v485_v0 = vpop.permute.xlu0 %484 }
  0xf8   : > { %794 = vrot.lane.b32.xlu0 %v719_v21, %s2639_s17  ;;  %v497_v42 = vsel %vm496_vm4, %v485_v0, %v487_v39 }
  0xf9   : > { %v538_v55 = vpop.permute.xlu2 %537  ;;  %v684_v21 = vunpack.c.l.b16 %v590_v28 }
  0xfb   : > { %v696_v13 = vpack.c.b16 %v687_v2, %v684_v21 }
  0xff   : > { %780 = vrot.lane.b32.xlu2 %v695_v12, %s2639_s17  ;;  %778 = vrot.lane.b32.xlu1 %v694_v56, %s2639_s17 }
 0x100   : > { %788 = vrot.lane.b32.xlu0 %v699_v8, %s2639_s17 }
 0x101   : > { %v532_v41 = vpop.permute.xlu2 %531 }
 0x107   : > { %914 = vrot.lane.b32.xlu2 %v500_v31, %s2640_s20  ;;  %912 = vrot.lane.b32.xlu1 %v499_v9, %s2640_s20 }
 0x108   : > { %782 = vrot.lane.b32.xlu0 %v696_v13, %s2639_s17 }
 0x109   : > { %v1210_v10 = vpop.permute.xlu2 %1209 }
 0x10f   : > { %908 = vrot.lane.b32.xlu2 %v498_v29, %s2640_s20  ;;  %906 = vrot.lane.b32.xlu1 %v497_v42, %s2640_s20 }
 0x110   : > { %916 = vrot.lane.b32.xlu0 %v495_v7, %s2640_s20  ;;  %v763_v8 = vpop.permute.xlu0 %762 }
 0x111   : > { %v1204_v32 = vpop.permute.xlu2 %1203  ;;  %v759_v37 = vpop.permute.xlu1 %758 }
 0x118   : > { %910 = vrot.lane.b32.xlu0 %v489_v18, %s2640_s20 }
 0x119   : > { %v761_v50 = vpop.permute.xlu2 %760  ;;  %v753_v12 = vpop.permute.xlu1 %752 }
 0x11a   : > { %v757_v56 = vpop.permute.xlu0 %756  ;;  %802 = vrot.lane.b32.xlu2 %v753_v12, %s2639_s17  ;;  %v766_v28 = vsel %vm539_vm5, %v759_v37, %v761_v50  ;;  %v767_v7 = vsel %vm539_vm5, %v761_v50, %v763_v8 }
 0x11b   : > { %810 = vrot.lane.b32.xlu1 %v766_v28, %s2639_s17 }
 0x120   : > { %928 = vrot.lane.b32.xlu0 %v538_v55, %s2640_s20 }
 0x121   : > { %v755_v52 = vpop.permute.xlu2 %754  ;;  %v536_v43 = vpop.permute.xlu1 %535 }
 0x122   : > { %v534_v21 = vpop.permute.xlu0 %533  ;;  %812 = vrot.lane.b32.xlu2 %v767_v7, %s2639_s17  ;;  %v765_v18 = vsel %vm539_vm5, %v755_v52, %v757_v56  ;;  %v543_v13 = vsel %vm539_vm5, %v536_v43, %v538_v55 }
 0x123   : > { %806 = vrot.lane.b32.xlu1 %v765_v18, %s2639_s17  ;;  %v542_v0 = vsel %vm539_vm5, %v534_v21, %v536_v43 }
 0x128   : > { %922 = vrot.lane.b32.xlu0 %v532_v41, %s2640_s20 }
 0x129   : > { %v3284_v2 = vpop.permute.xlu2 %1163  ;;  %v530_v31 = vpop.permute.xlu1 %529 }
 0x12a   : > { %v528_v9 = vpop.permute.xlu0 %527  ;;  %926 = vrot.lane.b32.xlu2 %v543_v13, %s2640_s20  ;;  %v541_v42 = vsel %vm539_vm5, %v530_v31, %v532_v41  ;;  %v764_v41 = vsel %vm539_vm5, %v753_v12, %v755_v52  ;;  %v4259_v52 = vld [vmem:[#allocation19_spill] sm:$0xff] }
 0x12b   : > { %924 = vrot.lane.b32.xlu1 %v542_v0, %s2640_s20  ;;  %v540_v50 = vsel %vm539_vm5, %v528_v9, %v530_v31  ;;  %v3319_v0 = vunpack.i.h.bf16 %v4259_v52 }
 0x130   : > { %1259 = vrot.lane.b32.xlu0 %v1210_v10, %s2638_s8 }
 0x131   : > { %v3291_v39 = vpop.permute.xlu2 %2603  ;;  %v1208_v29 = vpop.permute.xlu1 %1207 }
 0x132   : > { %v1206_v8 = vpop.permute.xlu0 %1205  ;;  %920 = vrot.lane.b32.xlu2 %v541_v42, %s2640_s20  ;;  %v1214_v28 = vsel %vm539_vm5, %v1208_v29, %v1210_v10 }
 0x133   : > { %918 = vrot.lane.b32.xlu1 %v540_v50, %s2640_s20  ;;  %v1213_v7 = vsel %vm539_vm5, %v1206_v8, %v1208_v29  ;;  %v3322_v29 = vunpack.i.l.bf16 %v4259_v52  ;;  %v4260_v50 = vld [vmem:[#allocation8_spill] sm:$0xff] }
 0x138   : > { %808 = vrot.lane.b32.xlu0 %v759_v37, %s2639_s17 }
 0x139   : > { %v3298_v55 = vpop.permute.xlu2 %1159  ;;  %v1202_v56 = vpop.permute.xlu1 %1201 }
 0x13a   : > { %v1200_v43 = vpop.permute.xlu0 %1199  ;;  %1257 = vrot.lane.b32.xlu2 %v1214_v28, %s2638_s8  ;;  %v1212_v37 = vsel %vm539_vm5, %v1202_v56, %v1204_v32  ;;  %v3327_v28 = vunpack.i.h.bf16 %v4260_v50 }
 0x13b   : > { %1255 = vrot.lane.b32.xlu1 %v1213_v7, %s2638_s8  ;;  %v1211_v10 = vsel %vm539_vm5, %v1200_v43, %v1202_v56  ;;  %v3330_v56 = vunpack.i.l.bf16 %v4260_v50  ;;  %v346_v50 = vmul.f32 %v3322_v29, %v4255_v30 }
 0x13d   : > { %v3349_v52 = vsel %vm326_vm1, %v3330_v56, %v3327_v28 }
 0x13e   : > { %v344_v27 = vmul.f32 %v3349_v52, %v4254_v61 }
 0x140   : > { %804 = vrot.lane.b32.xlu0 %v764_v41, %s2639_s17 }
 0x141   : > { %v3306_v21 = vpop.permute.xlu2 %798  ;;  %v2599_v18 = vpop.permute.xlu1 %2598 }
 0x142   : > { %v2594_v31 = vpop.permute.xlu0 %2593  ;;  %v3309_v13 = vunpack.i.h.bf16 %v2599_v18  ;;  %1251 = vrot.lane.b32.xlu2 %v1212_v37, %s2638_s8 }
 0x143   : > { %v3313_v9 = vunpack.i.h.bf16 %v2594_v31  ;;  %1249 = vrot.lane.b32.xlu1 %v1211_v10, %s2638_s8 }
 0x144   : > { %v1925_v12 = vmul.f32 %v3309_v13, %v2885_v20  ;;  %v3338_v20 = vsel %vm326_vm1, %v3322_v29, %v3319_v0 }
 0x145   : > { %v1922_v42 = vmul.f32 %v3313_v9, %v2911_v46  ;;  %4262 = vst [vmem:[#allocation11_spill] sm:$0xff] %v3338_v20 }
 0x146   : > { %v1933_v8 = vpack.c.bf16 %v1925_v12, %v1925_v12  ;;  %v4264_v12 = vld [vmem:[#allocation27_spill] sm:$0xff] }
 0x147   : > { %v1931_v43 = vpack.c.bf16 %v1922_v42, %v1922_v42  ;;  %v4265_v42 = vld [vmem:[#allocation28_spill] sm:$0xff] }
 0x148   : > { %v3332_v7 = vunpack.c.l.b16 %v1933_v8  ;;  %1253 = vrot.lane.b32.xlu0 %v1204_v32, %s2638_s8  ;;  %v3352_v32 = vunpack.i.h.bf16 %v3291_v39 }
 0x149   : > { %v3340_v41 = vunpack.c.l.b16 %v1931_v43  ;;  %v3342_v46 = vpop.permute.xlu2 %792  ;;  %v1168_v37 = vpop.permute.xlu1 %1167  ;;  %v347_v43 = vmul.f32 %v3338_v20, %v4256_v11 }
 0x14a   : > { %4261 = vst [vmem:[#allocation5_spill] sm:$0xff] %v3332_v7  ;;  %v1166_v10 = vpop.permute.xlu0 %1165  ;;  %902 = vrot.lane.b32.xlu2 %v4264_v12, %s2640_s20  ;;  %v343_v12 = vmul.f32 %v3330_v56, %v2785_v23  ;;  %v1916_v36 = vmul.f32 %v3352_v32, %v3060_v44  ;;  %v348_v44 = vmul.f32 %v3319_v0, %v4258_v3 }
 0x14b   : > { %4263 = vst [vmem:[#allocation12_spill] sm:$0xff] %v3340_v41  ;;  %900 = vrot.lane.b32.xlu1 %v4265_v42, %s2640_s20  ;;  %v4266_v42 = vld [vmem:[#allocation29_spill] sm:$0xff]  ;;  %v357_v8 = vpack.c.bf16 %v347_v43, %v346_v50  ;;  %v1172_v11 = vsel %vm496_vm4, %v1166_v10, %v1168_v37  ;;  %v1171_v23 = vsel %vm496_vm4, %v3284_v2, %v1166_v10  ;;  %v3385_v50 = vunpack.i.l.bf16 %v2594_v31 }
 0x14c   : > { %v4268_v51 = vpack.c.b16 %v4266_v42, %v4267_v5  ;;  %v355_v61 = vpack.c.bf16 %v344_v27, %v343_v12  ;;  %v1927_v25 = vpack.c.bf16 %v1916_v36, %v1916_v36  ;;  %v345_v5 = vmul.f32 %v3327_v28, %v4257_v15 }
 0x14d   : > { %v3387_v43 = vunpack.i.l.bf16 %v2599_v18  ;;  %v443_v27 = vunpack.c.l.b16 %v357_v8  ;;  %v358_v3 = vpack.c.bf16 %v348_v44, %v348_v44  ;;  %v3397_v18 = vsel %vm1015_vm6, %v3385_v50, %v3313_v9 }
 0x14e   : > { %v441_v10 = vunpack.c.h.b16 %v355_v61  ;;  %v3391_v36 = vunpack.c.l.b16 %v1927_v25  ;;  %v440_v42 = vunpack.c.l.b16 %v355_v61  ;;  %v3412_v44 = vunpack.i.l.bf16 %v3291_v39 }
 0x14f   : > { %v445_v61 = vunpack.c.l.b16 %v358_v3  ;;  %v1041_v3 = vmul.f32 %v3387_v43, %v2836_v53 }
 0x150   : > { %904 = vrot.lane.b32.xlu0 %v4268_v51, %s2640_s20  ;;  %v444_v51 = vunpack.c.h.b16 %v357_v8  ;;  %4269 = vst [vmem:[#allocation6_spill] sm:$0xff] %v3391_v36  ;;  %v452_v8 = vpack.c.b16 %v443_v27, %v440_v42  ;;  %v1038_v27 = vmul.f32 %v3385_v50, %v2850_v62 }
 0x151   : > { %v3372_v41 = vpop.permute.xlu2 %786  ;;  %v1158_v30 = vpop.permute.xlu1 %1157 }
 0x152   : > { %v2609_v7 = vpop.permute.xlu0 %2608  ;;  %1245 = vrot.lane.b32.xlu2 %v1172_v11, %s2638_s8  ;;  %v356_v11 = vpack.c.bf16 %v345_v5, %v345_v5  ;;  %v453_v15 = vpack.c.b16 %v444_v51, %v441_v10  ;;  %v1039_v10 = vmul.f32 %v3397_v18, %v2868_v6 }
 0x153   : > { %v3380_v20 = vunpack.i.h.bf16 %v2609_v7  ;;  %1243 = vrot.lane.b32.xlu1 %v1171_v23, %s2638_s8 }
 0x154   : > { %v442_v51 = vunpack.c.l.b16 %v356_v11  ;;  %v3432_v11 = vsel %vm1015_vm6, %v3412_v44, %v3352_v32  ;;  %v1048_v62 = vpack.c.bf16 %v1039_v10, %v1038_v27  ;;  %v1032_v27 = vmul.f32 %v3412_v44, %v2926_v4 }
 0x155   : > { %v1919_v2 = vmul.f32 %v3380_v20, %v3064_v24  ;;  %v3402_v24 = vsel %vm1015_vm6, %v3387_v43, %v3309_v13  ;;  %v1033_v10 = vmul.f32 %v3432_v11, %v2966_v45 }
 0x156   : > { %v1042_v39 = vmul.f32 %v3402_v24, %v2839_v54  ;;  %v454_v42 = vpack.c.b16 %v445_v61, %v442_v51  ;;  %v1043_v61 = vmul.f32 %v3309_v13, %v2852_v63  ;;  %v1120_v13 = vunpack.c.h.b16 %v1048_v62 }
 0x157   : > { %v1929_v12 = vpack.c.bf16 %v1919_v2, %v1919_v2  ;;  %v1119_v4 = vunpack.c.l.b16 %v1048_v62  ;;  %v1037_v62 = vmul.f32 %v3380_v20, %v2979_v49 }
 0x158   : > { %1247 = vrot.lane.b32.xlu0 %v1168_v37, %s2638_s8  ;;  %v1051_v45 = vpack.c.bf16 %v1043_v61, %v1043_v61 }
 0x159   : > { %v3404_v31 = vunpack.c.l.b16 %v1929_v12  ;;  %v797_v25 = vpop.permute.xlu1 %796  ;;  %v3414_v5 = vpop.permute.xlu2 %780  ;;  %v3427_v12 = vunpack.i.l.bf16 %v2609_v7 }
 0x15a   : > { %v1162_v23 = vpop.permute.xlu0 %1161  ;;  %896 = vrot.lane.b32.xlu2 %v453_v15, %s2640_s20  ;;  %v3409_v37 = vsel %vm637_vm2, %v797_v25, %v3306_v21  ;;  %v1050_v15 = vpack.c.bf16 %v1042_v39, %v1041_v3  ;;  %v1169_v25 = vsel %vm496_vm4, %v1158_v30, %v3298_v55  ;;  %v1124_v36 = vunpack.c.l.b16 %v1051_v45 }
 0x15b   : > { %894 = vrot.lane.b32.xlu1 %v452_v8, %s2640_s20  ;;  %v3438_v6 = vsel %vm1015_vm6, %v3427_v12, %v3380_v20  ;;  %v1170_v54 = vsel %vm496_vm4, %v3298_v55, %v1162_v23  ;;  %v1040_v8 = vmul.f32 %v3313_v9, %v2880_v14  ;;  %v1035_v14 = vmul.f32 %v3427_v12, %v2914_v47 }
 0x15c   : > { %v1036_v63 = vmul.f32 %v3438_v6, %v2923_v35  ;;  %v1123_v9 = vunpack.c.h.b16 %v1050_v15  ;;  %v1122_v3 = vunpack.c.l.b16 %v1050_v15 }
 0x15d   : > { %v1049_v39 = vpack.c.bf16 %v1040_v8, %v1040_v8 }
 0x15f   : > { %v1121_v35 = vunpack.c.l.b16 %v1049_v39 }
 0x160   : > { %898 = vrot.lane.b32.xlu0 %v454_v42, %s2640_s20  ;;  %v1129_v42 = vpack.c.b16 %v1123_v9, %v1120_v13 }
 0x161   : > { %v791_v53 = vpop.permute.xlu1 %790  ;;  %v3466_v30 = vpop.permute.xlu2 %914 }
 0x162   : > { %v801_v7 = vpop.permute.xlu0 %800  ;;  %1239 = vrot.lane.b32.xlu2 %v1170_v54, %s2638_s8  ;;  %v3451_v51 = vsel %vm637_vm2, %v791_v53, %v3342_v46  ;;  %v1044_v53 = vpack.c.bf16 %v1033_v10, %v1032_v27  ;;  %v1130_v10 = vpack.c.b16 %v1124_v36, %v1121_v35 }
 0x163   : > { %1237 = vrot.lane.b32.xlu1 %v1169_v25, %s2638_s8  ;;  %v3460_v55 = vsel %vm637_vm2, %v3306_v21, %v801_v7  ;;  %v1046_v21 = vpack.c.bf16 %v1036_v63, %v1035_v14  ;;  %v1128_v7 = vpack.c.b16 %v1122_v3, %v1119_v4  ;;  %v4270_v25 = vld [vmem:[#allocation33_spill] sm:$0xff]  ;;  %v1047_v63 = vpack.c.bf16 %v1037_v62, %v1037_v62 }
 0x164   : > { %v1034_v47 = vmul.f32 %v3352_v32, %v4270_v25  ;;  %v1114_v8 = vunpack.c.h.b16 %v1044_v53  ;;  %v1113_v61 = vunpack.c.l.b16 %v1044_v53  ;;  %v4272_v62 = vpack.c.b16 %v3102_v1, %v3100_v48 }
 0x165   : > { %v1117_v32 = vunpack.c.h.b16 %v1046_v21  ;;  %v1116_v27 = vunpack.c.l.b16 %v1046_v21  ;;  %v1118_v39 = vunpack.c.l.b16 %v1047_v63 }
 0x166   : > { %v1045_v14 = vpack.c.bf16 %v1034_v47, %v1034_v47  ;;  %v4271_v47 = vpack.c.b16 %v3066_v17, %v3072_v60  ;;  %v4274_v17 = vpack.c.b16 %v3180_v19, %v3178_v40 }
 0x167   : > { %v1126_v49 = vpack.c.b16 %v1117_v32, %v1114_v8  ;;  %v1125_v9 = vpack.c.b16 %v1116_v27, %v1113_v61  ;;  %v4273_v8 = vpack.c.b16 %v3145_v33, %v3143_v26 }
 0x168   : > { %1241 = vrot.lane.b32.xlu0 %v1162_v23, %s2638_s8  ;;  %v1115_v3 = vunpack.c.l.b16 %v1045_v14 }
 0x169   : > { %v785_v54 = vpop.permute.xlu1 %784  ;;  %v909_v13 = vpop.permute.xlu2 %908 }
 0x16a   : > { %v795_v2 = vpop.permute.xlu0 %794  ;;  %1233 = vrot.lane.b32.xlu2 %v1129_v42, %s2638_s8  ;;  %v3476_v15 = vsel %vm637_vm2, %v785_v54, %v3372_v41  ;;  %v249_v42 = vld [vmem:[%s4138_s2 + $0x18] sm:$0xff] }
 0x16b   : > { %1231 = vrot.lane.b32.xlu1 %v1128_v7, %s2638_s8  ;;  %v3481_v23 = vsel %vm637_vm2, %v3342_v46, %v795_v2  ;;  %v1127_v2 = vpack.c.b16 %v1118_v39, %v1115_v3 }
 0x170   : > { %1235 = vrot.lane.b32.xlu0 %v1130_v10, %s2638_s8 }
 0x171   : > { %v779_v20 = vpop.permute.xlu1 %778 }
 0x172   : > { %v789_v4 = vpop.permute.xlu0 %788  ;;  %1227 = vrot.lane.b32.xlu2 %v1126_v49, %s2638_s8  ;;  %v3487_v46 = vsel %vm637_vm2, %v779_v20, %v3414_v5 }
 0x173   : > { %1225 = vrot.lane.b32.xlu1 %v1125_v9, %s2638_s8  ;;  %v3492_v36 = vsel %vm637_vm2, %v3372_v41, %v789_v4  ;;  %v246_v41 = vld [vmem:[%s4138_s2] sm:$0xff] }
 0x174   : > { %v803_v45 = vpop.permute.xlu2 %802 }
 0x178   : > { %1229 = vrot.lane.b32.xlu0 %v1127_v2, %s2638_s8 }
 0x179   : > { %v913_v21 = vpop.permute.xlu1 %912 }
 0x17a   : > { %v783_v53 = vpop.permute.xlu0 %782  ;;  %1355 = vperm.xlu2 %2613, %v249_v42   ;;  %v937_v2 = vsel %vm930_vm3, %v913_v21, %v3466_v30 }
 0x17b   : > { %v3500_v54 = vsel %vm637_vm2, %v3414_v5, %v783_v53 }
 0x17c   : > { %v813_v7 = vpop.permute.xlu2 %812 }
 0x180   : > { %1340 = vperm.xlu0 %2614, %v246_v41  }
 0x181   : > { %v907_v35 = vpop.permute.xlu1 %906 }
 0x182   : > { %v917_v25 = vpop.permute.xlu0 %916  ;;  %1712 = vrot.lane.b32.xlu2 %v4271_v47, %s2643_s22  ;;  %v935_v41 = vsel %vm930_vm3, %v907_v35, %v909_v13 }
 0x183   : > { %v938_v20 = vsel %vm930_vm3, %v3466_v30, %v917_v25 }
 0x184   : > { %v927_v32 = vpop.permute.xlu2 %926 }
 0x188   : > { %2058 = vrot.lane.b32.xlu0 %v4272_v62, %s2643_s22 }
 0x18a   : > { %v911_v5 = vpop.permute.xlu0 %910  ;;  %1706 = vrot.lane.b32.xlu2 %v4273_v8, %s2643_s22 }
 0x18b   : > { %v936_v19 = vsel %vm930_vm3, %v909_v13, %v911_v5 }
 0x18c   : > { %v921_v1 = vpop.permute.xlu2 %920 }
 0x18d   : > { %v811_v61 = vpop.permute.xlu1 %810 }
 0x18e   : > { %v826_v27 = vsel %vm637_vm2, %v811_v61, %v813_v7 }
 0x18f   : > { %867 = vmatpush.bf16.msra.mxu1 %v826_v27 }
 0x190   : > { %2052 = vrot.lane.b32.xlu0 %v4274_v17, %s2643_s22 }
 0x192   : > { %v929_v60 = vpop.permute.xlu0 %928 }
 0x193   : > { %v942_v48 = vsel %vm930_vm3, %v927_v32, %v929_v60 }
 0x194   : > { %982 = vmatpush.bf16.msra.mxu3 %v942_v48  ;;  %v1258_v49 = vpop.permute.xlu2 %1257 }
 0x195   : > { %v807_v10 = vpop.permute.xlu1 %806 }
 0x19a   : > { %v923_v14 = vpop.permute.xlu0 %922 }
 0x19b   : > { %v940_v26 = vsel %vm930_vm3, %v921_v1, %v923_v14 }
 0x19c   : > { %983 = vmatpush.bf16.msra.mxu3 %v940_v26  ;;  %v1252_v3 = vpop.permute.xlu2 %1251 }
 0x19d   : > { %v925_v33 = vpop.permute.xlu1 %924 }
 0x19e   : > { %v941_v63 = vsel %vm930_vm3, %v925_v33, %v927_v32  ;;  %v2428_v32 = vld [vmem:[#allocation2 + $0x2c] sm:$0xf] }
 0x19f   : > { %963 = vmatpush.bf16.msra.mxu2 %v941_v63  ;;  %v2416_v33 = vld [vmem:[#allocation2 + $0xc] sm:$0xf]  ;;  %v2472_v63 = vld [vmem:[#allocation2 + $0x18] sm:$0xf0] }
 0x1a0   : > { %984 = vmatpush.bf16.msra.mxu3 %v938_v20 }
 0x1a2   : > { %v1260_v40 = vpop.permute.xlu0 %1259 }
 0x1a4   : > { %985 = vmatpush.bf16.msra.mxu3 %v936_v19  ;;  %v903_v25 = vpop.permute.xlu2 %902  ;;  %v2417_v19 = vor.u32 %v2472_v63, %v2416_v33  ;;  %v2360_v63 = vld [vmem:[#allocation2] sm:$0xf] }
 0x1a5   : > { %v919_v9 = vpop.permute.xlu1 %918 }
 0x1a6   : > { %v939_v4 = vsel %vm930_vm3, %v919_v9, %v921_v1 }
 0x1a7   : > { %964 = vmatpush.bf16.msra.mxu2 %v939_v4 }
 0x1aa   : > { %v809_v39 = vpop.permute.xlu0 %808 }
 0x1ab   : > { %v825_v42 = vsel %vm637_vm2, %v809_v39, %v811_v61  ;;  %965 = vmatpush.bf16.msra.mxu2 %v937_v2  ;;  %v2475_v61 = vld [vmem:[#allocation2 + $0x38] sm:$0xf0] }
 0x1ac   : > { %848 = vmatpush.bf16.msra.mxu0 %v825_v42  ;;  %v1246_v13 = vpop.permute.xlu2 %1245  ;;  %v2429_v17 = vor.u32 %v2475_v61, %v2428_v32  ;;  %v247_v42 = vld [vmem:[%s4138_s2 + $0x8] sm:$0xff] }
 0x1ad   : > { %v1256_v53 = vpop.permute.xlu1 %1255 }
 0x1ae   : > { %2016 = vrot.lane.b32.xlu0 %v2429_v17, %s2641_s21  ;;  %v2372_v17 = vld [vmem:[#allocation2 + $0x20] sm:$0xf] }
 0x1af   : > { %966 = vmatpush.bf16.msra.mxu2 %v935_v41 }
 0x1b2   : > { %v805_v7 = vpop.permute.xlu0 %804 }
 0x1b3   : > { %v823_v47 = vsel %vm637_vm2, %v803_v45, %v805_v7  ;;  %v824_v62 = vsel %vm637_vm2, %v805_v7, %v807_v10  ;;  %v2438_v10 = vld [vmem:[%s4137_s1] sm:$0xff]  ;;  %v2439_v7 = vld [vmem:[%s4137_s1 + $0x8] sm:$0xff] }
 0x1b4   : > { %849 = vmatpush.bf16.msra.mxu0 %v823_v47  ;;  %868 = vmatpush.bf16.msra.mxu1 %v824_v62 }
 0x1b5   : > { %v1250_v5 = vpop.permute.xlu1 %1249 }
 0x1b6   : > { %2010 = vrot.lane.b32.xlu0 %v2417_v19, %s2641_s21 }
 0x1b8   : > { %850 = vmatpush.bf16.msra.mxu0 %v3409_v37  ;;  %869 = vmatpush.bf16.msra.mxu1 %v3460_v55  ;;  %v2440_v37 = vld [vmem:[%s4137_s1 + $0x10] sm:$0xff]  ;;  %v1273_v55 = vsel %vm395_vm0, %v1258_v49, %v1260_v40  ;;  %v2441_v40 = vld [vmem:[%s4137_s1 + $0x18] sm:$0xff] }
 0x1ba   : > { %v1254_v30 = vpop.permute.xlu0 %1253 }
 0x1bc   : > { %851 = vmatpush.bf16.msra.mxu0 %v3451_v51  ;;  %870 = vmatpush.bf16.msra.mxu1 %v3481_v23  ;;  %v1272_v51 = vsel %vm395_vm0, %v1256_v53, %v1258_v49  ;;  %v897_v23 = vpop.permute.xlu2 %896  ;;  %v248_v49 = vld [vmem:[%s4138_s2 + $0x10] sm:$0xff] }
 0x1bd   : > { %v901_v21 = vpop.permute.xlu1 %900  ;;  %1350 = vperm.xlu1 %2612, %v248_v49   ;;  %v2461_v49 = vld [vmem:[#allocation2 + $0xc] sm:$0xf0] }
 0x1be   : > { %v933_v35 = vsel %vm930_vm3, %v901_v21, %v903_v25  ;;  %v2361_v19 = vor.u32 %v2461_v49, %v2360_v63 }
 0x1bf   : > { %967 = vmatpush.bf16.msra.mxu2 %v933_v35 }
 0x1c0   : > { %852 = vmatpush.bf16.msra.mxu0 %v3476_v15  ;;  %871 = vmatpush.bf16.msra.mxu1 %v3492_v36  ;;  %v1270_v36 = vsel %vm395_vm0, %v1250_v5, %v1252_v3 }
 0x1c2   : > { %v905_v45 = vpop.permute.xlu0 %904 }
 0x1c3   : > { %v934_v8 = vsel %vm930_vm3, %v903_v25, %v905_v45 }
 0x1c4   : > { %853 = vmatpush.bf16.msra.mxu0 %v3487_v46  ;;  %872 = vmatpush.bf16.msra.mxu1 %v3500_v54  ;;  %v1271_v46 = vsel %vm395_vm0, %v1252_v3, %v1254_v30  ;;  %v1240_v14 = vpop.permute.xlu2 %1239 }
 0x1c5   : > { %986 = vmatpush.bf16.msra.mxu3 %v934_v8  ;;  %v1244_v15 = vpop.permute.xlu1 %1243  ;;  %1345 = vperm.xlu1 %2612, %v247_v42   ;;  %v2443_v8 = vld [vmem:[%s4137_s1 + $0x28] sm:$0xff] }
 0x1c6   : > { %v1268_v60 = vsel %vm395_vm0, %v1244_v15, %v1246_v13 }
 0x1c7   : > { %2306 = vmatmul.msk.bf16.vlgmr.msra.gmra.mxu0 %vm839_vm7, %v2440_v37  ;;  %2308 = vmatmul.msk.bf16.vlgmr.msra.gmra.mxu1 %vm839_vm7, %v2440_v37 }
 0x1c8   : > { %1294 = vmatpush.bf16.msrb.mxu0 %v1272_v51  ;;  %1313 = vmatpush.bf16.msrb.mxu1 %v1273_v55 }
 0x1ca   : > { %v1248_v54 = vpop.permute.xlu0 %1247 }
 0x1cb   : > { %v1269_v27 = vsel %vm395_vm0, %v1246_v13, %v1248_v54  ;;  %v2442_v13 = vld [vmem:[%s4137_s1 + $0x20] sm:$0xff] }
 0x1cc   : > { %1295 = vmatpush.bf16.msrb.mxu0 %v1270_v36  ;;  %1314 = vmatpush.bf16.msrb.mxu1 %v1271_v46  ;;  %v1234_v39 = vpop.permute.xlu2 %1233 }
 0x1cd   : > { %v895_v48 = vpop.permute.xlu1 %894 }
 0x1ce   : > { %v931_v1 = vsel %vm930_vm3, %v895_v48, %v897_v23 }
 0x1cf   : > { %968 = vmatpush.bf16.msra.mxu2 %v931_v1 }
 0x1d0   : > { %1296 = vmatpush.bf16.msrb.mxu0 %v1268_v60  ;;  %1315 = vmatpush.bf16.msrb.mxu1 %v1269_v27  ;;  %v2464_v60 = vld [vmem:[#allocation2 + $0x2c] sm:$0xf0] }
 0x1d1   : > { %v2373_v48 = vor.u32 %v2464_v60, %v2372_v17 }
 0x1d2   : > { %v899_v26 = vpop.permute.xlu0 %898  ;;  %2318 = vmatmul.msk.bf16.vlgmr.msra.gmra.mxu2 %vm839_vm7, %v2438_v10 }
 0x1d3   : > { %v932_v20 = vsel %vm930_vm3, %v897_v23, %v899_v26  ;;  %1508 = vrot.lane.b32.xlu1 %v2373_v48, %s2641_s21 }
 0x1d4   : > { %987 = vmatpush.bf16.msra.mxu3 %v932_v20  ;;  %v1228_v62 = vpop.permute.xlu2 %1227 }
 0x1d5   : > { %v1238_v9 = vpop.permute.xlu1 %1237 }
 0x1d6   : > { %v1266_v4 = vsel %vm395_vm0, %v1238_v9, %v1240_v14 }
 0x1d7   : > { %2307 = vmatmul.msk.bf16.gmra.mxu0 %vm839_vm7, %v2441_v40  ;;  %2309 = vmatmul.msk.bf16.gmra.mxu1 %vm839_vm7, %v2441_v40 }
 0x1d8   : > { %2320 = vmatmul.msk.bf16.vlgmr.msra.gmra.mxu3 %vm839_vm7, %v2438_v10  ;;  %1297 = vmatpush.bf16.msrb.mxu0 %v1266_v4 }
 0x1da   : > { %v1242_v3 = vpop.permute.xlu0 %1241 }
 0x1db   : > { %v1267_v2 = vsel %vm395_vm0, %v1240_v14, %v1242_v3  ;;  %1502 = vrot.lane.b32.xlu1 %v2361_v19, %s2641_s21 }
 0x1dc   : > { %1316 = vmatpush.bf16.msrb.mxu1 %v1267_v2 }
 0x1dd   : > { %v1232_v53 = vpop.permute.xlu1 %1231 }
 0x1de   : > { %v1264_v41 = vsel %vm395_vm0, %v1232_v53, %v1234_v39 }
 0x1df   : > { %1298 = vmatpush.bf16.msrb.mxu0 %v1264_v41 }
 0x1e2   : > { %v1236_v25 = vpop.permute.xlu0 %1235  ;;  %2319 = vmatmul.msk.bf16.gmra.mxu2 %vm839_vm7, %v2439_v7 }
 0x1e3   : > { %v1265_v47 = vsel %vm395_vm0, %v1234_v39, %v1236_v25 }
 0x1e4   : > { %1317 = vmatpush.bf16.msrb.mxu1 %v1265_v47 }
 0x1e5   : > { %v1226_v5 = vpop.permute.xlu1 %1225 }
 0x1e6   : > { %v1262_v30 = vsel %vm395_vm0, %v1226_v5, %v1228_v62 }
 0x1e7   : > { %1299 = vmatpush.bf16.msrb.mxu0 %v1262_v30 }
 0x1e8   : > { %2321 = vmatmul.msk.bf16.gmra.mxu3 %vm839_vm7, %v2439_v7 }
 0x1ea   : > { %v1230_v21 = vpop.permute.xlu0 %1229  ;;  %2354 = vmatmul.msk.bf16.vlgmr.msrb.gmra.mxu0 %vm839_vm7, %v2442_v13 }
 0x1eb   : > { %v1263_v35 = vsel %vm395_vm0, %v1228_v62, %v1230_v21 }
 0x1ec   : > { %1318 = vmatpush.bf16.msrb.mxu1 %v1263_v35 }
 0x1ef   : > { %2356 = vmatmul.msk.bf16.vlgmr.msrb.gmra.mxu1 %vm839_vm7, %v2442_v13 }
 0x1f2   : > { %v3592_v45 = vpop.permute.xlu0 %1340 }
 0x1fa   : > { %v3597_v37 = vpop.permute.xlu0 %2058  ;;  %2355 = vmatmul.msk.bf16.gmra.mxu0 %vm839_vm7, %v2443_v8 }
 0x1fb   : > { %2098 = vrot.lane.b32.xlu0 %v3597_v37, %s2638_s8 }
 0x1ff   : > { %2357 = vmatmul.msk.bf16.gmra.mxu1 %vm839_vm7, %v2443_v8 }
 0x202   : > { %v3603_v51 = vpop.permute.xlu0 %2052 }
 0x203   : > { %2092 = vrot.lane.b32.xlu0 %v3603_v51, %s2638_s8 }
 0x220   : > { %v3607_v55 = vpop.permute.xlu0 %2016 }
 0x221   : > { %2086 = vrot.lane.b32.xlu0 %v3607_v55, %s2638_s8 }
 0x22f   : > { %v3612_v20 = vpop.permute.xlu1 %1350 }
 0x237   : > { %v3617_v5 = vpop.permute.xlu1 %1345 }
 0x244   : > { %v855_v15 = vpop.f32.mrf.mxu0  ;;  %v874_v23 = vpop.f32.mrf.mxu1 }
 0x24c   : > { %v857_v36 = vpop.f32.mrf.mxu0  ;;  %v876_v46 = vpop.f32.mrf.mxu1 }
 0x254   : > { %v860_v54 = vpop.f32.mrf.mxu0  ;;  %v879_v32 = vpop.f32.mrf.mxu1 }
 0x255   : > { %v970_v61 = vpop.f32.mrf.mxu2 }
 0x256   : > { %v971_v14 = vadd.f32 %v970_v61, %v855_v15 }
 0x25b   : > { %v989_v1 = vpop.f32.mrf.mxu3 }
 0x25c   : > { %v862_v27 = vpop.f32.mrf.mxu0  ;;  %v881_v10 = vpop.f32.mrf.mxu1  ;;  %v990_v9 = vadd.f32 %v989_v1, %v874_v23 }
 0x25d   : > { %v972_v26 = vpop.f32.mrf.mxu2 }
 0x25e   : > { %v973_v42 = vadd.f32 %v972_v26, %v857_v36 }
 0x263   : > { %v991_v3 = vpop.f32.mrf.mxu3 }
 0x264   : > { %v992_v30 = vadd.f32 %v991_v3, %v876_v46 }
 0x265   : > { %v975_v47 = vpop.f32.mrf.mxu2 }
 0x266   : > { %v976_v61 = vadd.f32 %v975_v47, %v860_v54 }
 0x267   : > { %v1301_v33 = vpop.f32.mrf.mxu0 }
 0x268   : > { %v1330_v40 = vadd.f32 %v1301_v33, %v971_v14 }
 0x26a   : > { %v1358_v4 = vadd.f32 %v3592_v45, %v1330_v40 }
 0x26b   : > { %v994_v17 = vpop.f32.mrf.mxu3 }
 0x26c   : > { %v1320_v39 = vpop.f32.mrf.mxu1  ;;  %v1366_v53 = vmul.f32 0.01, %v1358_v4  ;;  %v995_v26 = vadd.f32 %v994_v17, %v879_v32 }
 0x26d   : > { %v1331_v2 = vadd.f32 %v1320_v39, %v990_v9  ;;  %v977_v33 = vpop.f32.mrf.mxu2 }
 0x26e   : > { %v1374_v13 = vmax.f32 %v1358_v4, %v1366_v53  ;;  %v978_v4 = vadd.f32 %v977_v33, %v862_v27  ;;  %v4278_v33 = vld [vmem:[#allocation40_spill] sm:$0xff] }
 0x26f   : > { %v1359_v41 = vadd.f32 %v3592_v45, %v1331_v2  ;;  %v1303_v7 = vpop.f32.mrf.mxu0 }
 0x270   : > { %v1332_v25 = vadd.f32 %v1303_v7, %v973_v42  ;;  %v3629_v7 = vpop.permute.xlu2 %1355 }
 0x271   : > { %v1367_v62 = vmul.f32 0.01, %v1359_v41 }
 0x272   : > { %v1360_v35 = vadd.f32 %v3617_v5, %v1332_v25 }
 0x273   : > { %v1375_v21 = vmax.f32 %v1359_v41, %v1367_v62  ;;  %v996_v53 = vpop.f32.mrf.mxu3  ;;  %v4275_v62 = vld [vmem:[#allocation36_spill] sm:$0xff] }
 0x274   : > { %v1322_v8 = vpop.f32.mrf.mxu1  ;;  %v1368_v36 = vmul.f32 0.01, %v1360_v35 }
 0x275   : > { %v1382_v15 = vpack.c.bf16 %v1375_v21, %v1374_v13  ;;  %v1333_v23 = vadd.f32 %v1322_v8, %v992_v30  ;;  %v4276_v13 = vld [vmem:[#allocation39_spill] sm:$0xff] }
 0x276   : > { %v1376_v63 = vmax.f32 %v1360_v35, %v1368_v36  ;;  %v997_v35 = vadd.f32 %v996_v53, %v881_v10  ;;  %v4277_v36 = vld [vmem:[#allocation37_spill] sm:$0xff] }
 0x277   : > { %1386 = vst [vmem:[#allocation2 + $0x4] sm:$0xff] %v1382_v15  ;;  %v1361_v60 = vadd.f32 %v3617_v5, %v1333_v23  ;;  %v1306_v48 = vpop.f32.mrf.mxu0  ;;  %v3627_v41 = vunpack.c.l.bf16 %v1382_v15  ;;  %v3631_v47 = vunpack.c.h.bf16 %v1382_v15 }
 0x278   : > { %v1334_v1 = vadd.f32 %v1306_v48, %v976_v61 }
 0x279   : > { %v1369_v14 = vmul.f32 0.01, %v1361_v60 }
 0x27a   : > { %v1362_v49 = vadd.f32 %v3612_v20, %v1334_v1 }
 0x27b   : > { %v1377_v46 = vmax.f32 %v1361_v60, %v1369_v14  ;;  %v1604_v60 = vmul.f32 %v4277_v36, %v3627_v41 }
 0x27c   : > { %v1325_v40 = vpop.f32.mrf.mxu1  ;;  %v1370_v54 = vmul.f32 0.01, %v1362_v49 }
 0x27d   : > { %v1383_v19 = vpack.c.bf16 %v1377_v46, %v1376_v63  ;;  %v1335_v9 = vadd.f32 %v1325_v40, %v995_v26  ;;  %v1605_v63 = vmul.f32 %v3631_v47, %v4278_v33 }
 0x27e   : > { %v1378_v8 = vmax.f32 %v1362_v49, %v1370_v54  ;;  %v2408_v17 = vld [vmem:[#allocation2 + $0x4] sm:$0xf]  ;;  %v2466_v26 = vld [vmem:[#allocation2 + $0x8] sm:$0xf] }
 0x27f   : > { %1387 = vst [vmem:[#allocation2 + $0x14] sm:$0xff] %v1383_v19  ;;  %v1363_v3 = vadd.f32 %v3612_v20, %v1335_v9  ;;  %v1308_v39 = vpop.f32.mrf.mxu0  ;;  %v3623_v2 = vunpack.c.l.bf16 %v1383_v19  ;;  %v3625_v42 = vunpack.c.h.bf16 %v1383_v19  ;;  %v2384_v14 = vld [vmem:[#allocation2 + $0x4] sm:$0xf] }
 0x280   : > { %v1336_v32 = vadd.f32 %v1308_v39, %v978_v4  ;;  %v1616_v39 = vpack.c.bf16 %v1605_v63, %v1604_v60  ;;  %v4281_v60 = vld [vmem:[#allocation46_spill] sm:$0xff]  ;;  %v1390_v33 = vld [vmem:[#allocation2] sm:$0xff]  ;;  %v2368_v63 = vld [vmem:[#allocation2 + $0x8] sm:$0xf] }
 0x281   : > { %v1371_v25 = vmul.f32 0.01, %v1363_v3  ;;  %v1607_v30 = vmul.f32 %v4275_v62, %v3623_v2  ;;  %v1608_v21 = vmul.f32 %v3625_v42, %v4276_v13  ;;  %v1937_v53 = vmul.f32 %v3118_v16, %v3623_v2  ;;  %v2470_v16 = vld [vmem:[#allocation2 + $0x8] sm:$0xf] }
 0x282   : > { %v1364_v27 = vadd.f32 %v3629_v7, %v1336_v32  ;;  %v4279_v32 = vld [vmem:[#allocation51_spill] sm:$0xff] }
 0x283   : > { %v1379_v23 = vmax.f32 %v1363_v3, %v1371_v25  ;;  %v1618_v10 = vpack.c.bf16 %v1608_v21, %v1607_v30  ;;  %v1938_v25 = vmul.f32 %v3625_v42, %v4279_v32 }
 0x284   : > { %v1327_v61 = vpop.f32.mrf.mxu1  ;;  %v1372_v15 = vmul.f32 0.01, %v1364_v27 }
 0x285   : > { %v3640_v48 = vpack.c.bf16 %v1379_v23, %v1378_v8  ;;  %v1337_v1 = vadd.f32 %v1327_v61, %v997_v35  ;;  %v1688_v13 = vunpack.c.h.b16 %v1618_v10  ;;  %v1685_v23 = vunpack.c.h.b16 %v1616_v39 }
 0x286   : > { %v2471_v46 = vld [vmem:[#allocation2 + $0x10] sm:$0xf0]  ;;  %v2386_v19 = vld [vmem:[#allocation2 + $0x14] sm:$0xf0]  ;;  %v1380_v62 = vmax.f32 %v1364_v27, %v1372_v15 }
 0x287   : > { %v2467_v40 = vld [vmem:[#allocation2 + $0x10] sm:$0xf0]  ;;  %1388 = vst [vmem:[#allocation2 + $0x24] sm:$0xff] %v3640_v48  ;;  %v1365_v49 = vadd.f32 %v3629_v7, %v1337_v1  ;;  %v2409_v9 = vor.u32 %v2471_v46, %v2408_v17  ;;  %v2389_v54 = vor.u32 %v2466_v26, %v2386_v19  ;;  %v2410_v21 = vld [vmem:[#allocation2 + $0x14] sm:$0xf0]  ;;  %v4280_v17 = vld [vmem:[#allocation44_spill] sm:$0xff]  ;;  %v1935_v1 = vmul.f32 %v3631_v47, %v4281_v60 }
 0x288   : > { %v2385_v4 = vor.u32 %v2467_v40, %v2384_v14  ;;  %v1392_v35 = vld [vmem:[#allocation2 + $0x10] sm:$0xff]  ;;  %v2462_v61 = vld [vmem:[#allocation2 + $0x14] sm:$0xf0]  ;;  %v1934_v36 = vmul.f32 %v4280_v17, %v3627_v41  ;;  %v1948_v26 = vpack.c.bf16 %v1938_v25, %v1937_v53  ;;  %v1697_v27 = vpack.c.b16 %v1688_v13, %v1685_v23  ;;  %v1391_v46 = vld [vmem:[#allocation2 + $0x8] sm:$0xf] }
 0x289   : > { %v1373_v3 = vmul.f32 0.01, %v1365_v49  ;;  %2006 = vrot.lane.b32.xlu1 %v2409_v9, %s2641_s21  ;;  %1668 = vrot.lane.b32.xlu0 %v2389_v54, %s2641_s21  ;;  %v1393_v14 = vld [vmem:[#allocation2 + $0x18] sm:$0xf]  ;;  %v2413_v15 = vor.u32 %v2470_v16, %v2410_v21  ;;  %v3660_v40 = vunpack.c.l.bf16 %v1392_v35  ;;  %v3662_v19 = vunpack.c.h.bf16 %v1392_v35  ;;  %v4282_v25 = vld [vmem:[#allocation15_spill] sm:$0xff] }
 0x28a   : > { %1666 = vrot.lane.b32.xlu2 %v2385_v4, %s2641_s21  ;;  %v3664_v9 = vunpack.c.l.bf16 %v1393_v14  ;;  %v1946_v4 = vpack.c.bf16 %v1935_v1, %v1934_v36  ;;  %v3668_v54 = vunpack.c.l.bf16 %v1390_v33  ;;  %v3673_v53 = vunpack.c.l.bf16 %v1391_v46  ;;  %v2362_v35 = vld [vmem:[#allocation2 + $0x10] sm:$0xf0]  ;;  %v4284_v23 = vld [vmem:[#allocation14_spill] sm:$0xff]  ;;  %v4285_v36 = vld [vmem:[#allocation4_spill] sm:$0xff] }
 0x28b   : > { %v1381_v30 = vmax.f32 %v1365_v49, %v1373_v3  ;;  %v2369_v49 = vor.u32 %v2462_v61, %v2368_v63  ;;  %v3670_v3 = vunpack.c.h.bf16 %v1390_v33  ;;  %v2033_v32 = vunpack.c.l.b16 %v1948_v26  ;;  %v4286_v1 = vld [vmem:[#allocation7_spill] sm:$0xff] }
 0x28c   : > { %v1687_v21 = vunpack.c.l.b16 %v1618_v10  ;;  %v1435_v61 = vmul.f32 %v4284_v23, %v3664_v9  ;;  %v2030_v17 = vunpack.c.l.b16 %v1946_v4  ;;  %v1430_v60 = vmul.f32 %v4285_v36, %v3668_v54  ;;  %v2460_v33 = vld [vmem:[#allocation2 + $0x4] sm:$0xf] }
 0x28d   : > { %v3653_v8 = vpack.c.bf16 %v1381_v30, %v1380_v62  ;;  %v1433_v62 = vmul.f32 %v4282_v25, %v3660_v40  ;;  %v4283_v30 = vld [vmem:[#allocation17_spill] sm:$0xff]  ;;  %v1431_v14 = vmul.f32 %v3670_v3, %v4286_v1  ;;  %v1684_v16 = vunpack.c.l.b16 %v1616_v39 }
 0x28e   : > { %v1434_v13 = vmul.f32 %v3662_v19, %v4283_v30  ;;  %v2042_v63 = vpack.c.b16 %v2033_v32, %v2030_v17  ;;  %v2365_v46 = vor.u32 %v2460_v33, %v2362_v35  ;;  %v1565_v10 = vmul.f32 %v3223_v34, %v3664_v9  ;;  %v1395_v33 = vld [vmem:[#allocation2 + $0x28] sm:$0xf] }
 0x28f   : > { %1389 = vst [vmem:[#allocation2 + $0x34] sm:$0xff] %v3653_v8  ;;  %v1696_v25 = vpack.c.b16 %v1687_v21, %v1684_v16  ;;  %v1445_v30 = vpack.c.bf16 %v1435_v61, %v1435_v61  ;;  %v1442_v23 = vpack.c.bf16 %v1431_v14, %v1430_v60  ;;  %v1562_v39 = vmul.f32 %v3219_v58, %v3673_v53 }
 0x290   : > { %v2034_v1 = vunpack.c.h.b16 %v1948_v26  ;;  %v1563_v32 = vmul.f32 %v3225_v22, %v3660_v40  ;;  %v1564_v34 = vmul.f32 %v3662_v19, %v3235_v59  ;;  %v2031_v35 = vunpack.c.h.b16 %v1946_v4 }
 0x291   : > { %1704 = vrot.lane.b32.xlu1 %v1697_v27, %s2643_s22  ;;  %1506 = vrot.lane.b32.xlu0 %v2369_v49, %s2641_s21  ;;  %v4287_v27 = vld [vmem:[#allocation3_spill] sm:$0xff]  ;;  %v1444_v49 = vpack.c.bf16 %v1434_v13, %v1433_v62  ;;  %v1575_v13 = vpack.c.bf16 %v1565_v10, %v1565_v10  ;;  %v1531_v21 = vunpack.c.l.b16 %v1445_v30  ;;  %v1560_v61 = vmul.f32 %v3221_v38, %v3668_v54 }
 0x292   : > { %2008 = vrot.lane.b32.xlu2 %v2413_v15, %s2641_s21  ;;  %v1432_v15 = vmul.f32 %v4287_v27, %v3673_v53  ;;  %v1561_v58 = vmul.f32 %v3670_v3, %v3230_v57  ;;  %v1526_v17 = vunpack.c.l.b16 %v1442_v23  ;;  %v1573_v60 = vpack.c.bf16 %v1562_v39, %v1562_v39 }
 0x293   : > { %v1529_v62 = vunpack.c.l.b16 %v1444_v49  ;;  %v2043_v26 = vpack.c.b16 %v2034_v1, %v2031_v35  ;;  %v1574_v16 = vpack.c.bf16 %v1564_v34, %v1563_v32  ;;  %v1637_v27 = vunpack.c.l.b16 %v1575_v13  ;;  %v1394_v1 = vld [vmem:[#allocation2 + $0x20] sm:$0xff] }
 0x294   : > { %v1443_v36 = vpack.c.bf16 %v1432_v15, %v1432_v15  ;;  %v3703_v59 = vunpack.c.l.bf16 %v3640_v48  ;;  %v3706_v15 = vunpack.c.h.bf16 %v3640_v48  ;;  %v1572_v38 = vpack.c.bf16 %v1561_v58, %v1560_v61 }
 0x295   : > { %v1538_v22 = vpack.c.b16 %v1529_v62, %v1526_v17  ;;  %v1634_v57 = vunpack.c.l.b16 %v1573_v60  ;;  %v3716_v30 = vunpack.c.h.bf16 %v3653_v8  ;;  %v1527_v48 = vunpack.c.h.b16 %v1442_v23  ;;  %v4288_v23 = vld [vmem:[#allocation26_spill] sm:$0xff]  ;;  %v4289_v17 = vld [vmem:[#allocation25_spill] sm:$0xff] }
 0x296   : > { %v1528_v14 = vunpack.c.l.b16 %v1443_v36  ;;  %v1397_v10 = vld [vmem:[#allocation2 + $0x38] sm:$0xf]  ;;  %v1635_v39 = vunpack.c.l.b16 %v1574_v16  ;;  %v1636_v36 = vunpack.c.h.b16 %v1574_v16  ;;  %v1920_v32 = vmul.f32 %v3385_v50, %v3703_v59  ;;  %v1396_v35 = vld [vmem:[#allocation2 + $0x30] sm:$0xff] }
 0x297   : > { %v1921_v34 = vmul.f32 %v3706_v15, %v3397_v18  ;;  %v1632_v13 = vunpack.c.l.b16 %v1572_v38  ;;  %v1633_v61 = vunpack.c.h.b16 %v1572_v38  ;;  %v3733_v60 = vmul.f32 %v4289_v17, %v3703_v59  ;;  %v2468_v38 = vld [vmem:[#allocation2 + $0x28] sm:$0xf] }
 0x298   : > { %v1540_v4 = vpack.c.b16 %v1531_v21, %v1528_v14  ;;  %v3723_v21 = vunpack.c.l.bf16 %v1397_v10  ;;  %v1924_v50 = vmul.f32 %v3716_v30, %v3402_v24  ;;  %v2394_v14 = vld [vmem:[#allocation2 + $0x34] sm:$0xf0]  ;;  %v4292_v24 = vld [vmem:[#allocation24_spill] sm:$0xff] }
 0x299   : > { %2048 = vrot.lane.b32.xlu1 %v2042_v63, %s2643_s22  ;;  %1702 = vrot.lane.b32.xlu0 %v1696_v25, %s2643_s22  ;;  %v1530_v63 = vunpack.c.h.b16 %v1444_v49  ;;  %v3713_v25 = vunpack.c.l.bf16 %v1395_v33  ;;  %v1646_v49 = vpack.c.b16 %v1637_v27, %v1634_v57  ;;  %v1644_v18 = vpack.c.b16 %v1635_v39, %v1632_v13  ;;  %v4290_v33 = vld [vmem:[#allocation9_spill] sm:$0xff]  ;;  %v4291_v57 = vld [vmem:[#allocation18_spill] sm:$0xff] }
 0x29a   : > { %1504 = vrot.lane.b32.xlu2 %v2365_v46, %s2641_s21  ;;  %v3709_v46 = vunpack.c.l.bf16 %v3653_v8  ;;  %v1930_v16 = vpack.c.bf16 %v1921_v34, %v1920_v32  ;;  %v3741_v27 = vunpack.c.h.bf16 %v1394_v1  ;;  %v4293_v32 = vld [vmem:[#allocation20_spill] sm:$0xff] }
 0x29b   : > { %v1539_v62 = vpack.c.b16 %v1530_v63, %v1527_v48  ;;  %v3729_v58 = vmul.f32 %v4288_v23, %v3713_v25  ;;  %v3745_v63 = vunpack.c.h.bf16 %v1396_v35  ;;  %v3753_v48 = vmul.f32 %v3716_v30, %v4292_v24 }
 0x29c   : > { %v1923_v8 = vmul.f32 %v3387_v43, %v3709_v46  ;;  %v1418_v43 = vmul.f32 %v4290_v33, %v3713_v25  ;;  %v3749_v10 = vmul.f32 %v4291_v57, %v3709_v46  ;;  %v1421_v34 = vmul.f32 %v4293_v32, %v3723_v21  ;;  %v4294_v33 = vld [vmem:[#allocation10_spill] sm:$0xff]  ;;  %v2469_v32 = vld [vmem:[#allocation2 + $0x30] sm:$0xf0] }
 0x29d   : > { %v1969_v13 = vunpack.c.h.b16 %v1930_v16 }
 0x29e   : > { %v1932_v39 = vpack.c.bf16 %v1924_v50, %v1923_v8  ;;  %v1429_v17 = vpack.c.bf16 %v1421_v34, %v1421_v34  ;;  %v4295_v50 = vld [vmem:[#allocation13_spill] sm:$0xff] }
 0x29f   : > { %v1417_v24 = vmul.f32 %v3741_v27, %v4295_v50  ;;  %v1914_v50 = vmul.f32 %v3412_v44, %v3627_v41  ;;  %v1918_v44 = vmul.f32 %v3625_v42, %v3438_v6 }
 0x2a0   : > { %v1972_v23 = vunpack.c.h.b16 %v1932_v39 }
 0x2a1   : > { %1544 = vrot.lane.b32.xlu1 %v1538_v22, %s2643_s22  ;;  %1548 = vrot.lane.b32.xlu0 %v1540_v4, %s2643_s22  ;;  %v1645_v22 = vpack.c.b16 %v1636_v36, %v1633_v61  ;;  %v3743_v4 = vunpack.c.l.bf16 %v1396_v35  ;;  %v2397_v36 = vor.u32 %v2468_v38, %v2394_v14  ;;  %v1427_v35 = vpack.c.bf16 %v1418_v43, %v1418_v43  ;;  %v4297_v14 = vld [vmem:[#allocation23_spill] sm:$0xff] }
 0x2a2   : > { %2050 = vrot.lane.b32.xlu2 %v2043_v26, %s2643_s22  ;;  %v3737_v26 = vunpack.c.l.bf16 %v1394_v1  ;;  %v1968_v1 = vunpack.c.l.b16 %v1930_v16  ;;  %v1971_v61 = vunpack.c.l.b16 %v1932_v39  ;;  %v1420_v16 = vmul.f32 %v3745_v63, %v4297_v14  ;;  %v2474_v14 = vld [vmem:[#allocation2 + $0x30] sm:$0xf0] }
 0x2a3   : > { %v3762_v8 = vunpack.c.l.b16 %v1427_v35  ;;  %v3774_v38 = vunpack.c.l.b16 %v1429_v17  ;;  %v1412_v39 = vmul.f32 %v3327_v28, %v3673_v53  ;;  %v2392_v28 = vld [vmem:[#allocation2 + $0x24] sm:$0xf] }
 0x2a4   : > { %v1416_v57 = vmul.f32 %v4294_v33, %v3737_v26  ;;  %v3770_v43 = vpack.c.b16 %v1971_v61, %v1968_v1  ;;  %v1415_v33 = vmul.f32 %v3319_v0, %v3664_v9 }
 0x2a5   : > { %v1475_v1 = vpack.c.b16 %v3774_v38, %v3762_v8  ;;  %v1423_v61 = vpack.c.bf16 %v1412_v39, %v1412_v39  ;;  %v1413_v39 = vmul.f32 %v3322_v29, %v3660_v40 }
 0x2a6   : > { %v1426_v34 = vpack.c.bf16 %v1417_v24, %v1416_v57  ;;  %v1425_v0 = vpack.c.bf16 %v1415_v33, %v1415_v33 }
 0x2a8   : > { %v1465_v53 = vunpack.c.h.b16 %v1426_v34  ;;  %v1464_v57 = vunpack.c.l.b16 %v1426_v34  ;;  %v3803_v6 = vunpack.c.l.b16 %v1425_v0 }
 0x2a9   : > { %1718 = vrot.lane.b32.xlu1 %v1644_v18, %s2639_s17  ;;  %1722 = vrot.lane.b32.xlu0 %v1646_v49, %s2639_s17  ;;  %v3772_v49 = vpack.c.b16 %v1972_v23, %v1969_v13  ;;  %v1915_v13 = vmul.f32 %v3631_v47, %v3432_v11  ;;  %v1917_v23 = vmul.f32 %v3427_v12, %v3623_v2  ;;  %v4298_v2 = vld [vmem:[#allocation22_spill] sm:$0xff] }
 0x2aa   : > { %1546 = vrot.lane.b32.xlu2 %v1539_v62, %s2643_s22  ;;  %v4296_v62 = vld [vmem:[#allocation21_spill] sm:$0xff]  ;;  %v1410_v12 = vmul.f32 %v3330_v56, %v3668_v54  ;;  %v1441_v47 = vmul.f32 %v4298_v2, %v3723_v21  ;;  %v4299_v56 = vld [vmem:[#allocation11_spill] sm:$0xff] }
 0x2ab   : > { %v1419_v18 = vmul.f32 %v4296_v62, %v3743_v4  ;;  %v2393_v62 = vor.u32 %v2469_v32, %v2392_v28  ;;  %v1926_v41 = vpack.c.bf16 %v1915_v13, %v1914_v50  ;;  %v1928_v42 = vpack.c.bf16 %v1918_v44, %v1917_v23  ;;  %v2465_v50 = vld [vmem:[#allocation2 + $0x34] sm:$0xf0]  ;;  %v2420_v13 = vld [vmem:[#allocation2 + $0x24] sm:$0xf] }
 0x2ac   : > { %v1414_v54 = vmul.f32 %v3662_v19, %v4299_v56  ;;  %v4300_v23 = vld [vmem:[#allocation30_spill] sm:$0xff]  ;;  %v1449_v2 = vpack.c.bf16 %v1441_v47, %v1441_v47  ;;  %v4302_v47 = vld [vmem:[#allocation45_spill] sm:$0xff] }
 0x2ad   : > { %v1428_v35 = vpack.c.bf16 %v1420_v16, %v1419_v18  ;;  %v3801_v18 = vunpack.c.l.b16 %v1423_v61  ;;  %v1411_v16 = vmul.f32 %v3670_v3, %v3349_v52  ;;  %v1966_v34 = vunpack.c.h.b16 %v1928_v42  ;;  %v2473_v61 = vld [vmem:[#allocation2 + $0x28] sm:$0xf]  ;;  %v2374_v56 = vld [vmem:[#allocation2 + $0x30] sm:$0xf0] }
 0x2ae   : > { %v1965_v33 = vunpack.c.l.b16 %v1928_v42  ;;  %v1611_v28 = vmul.f32 %v3706_v15, %v4300_v23  ;;  %v1622_v52 = vpack.c.bf16 %v3753_v48, %v3749_v10  ;;  %v1424_v29 = vpack.c.bf16 %v1414_v54, %v1413_v39  ;;  %v4306_v23 = vld [vmem:[#allocation49_spill] sm:$0xff] }
 0x2af   : > { %v1468_v17 = vunpack.c.h.b16 %v1428_v35  ;;  %v1467_v24 = vunpack.c.l.b16 %v1428_v35  ;;  %v1472_v32 = vpack.c.b16 %v3803_v6, %v3801_v18  ;;  %v1962_v35 = vunpack.c.l.b16 %v1926_v41 }
 0x2b0   : > { %v1422_v3 = vpack.c.bf16 %v1411_v16, %v1410_v12  ;;  %v1461_v44 = vunpack.c.l.b16 %v1424_v29  ;;  %v1620_v10 = vpack.c.bf16 %v1611_v28, %v3733_v60  ;;  %v1447_v42 = vpack.c.bf16 %v3729_v58, %v3729_v58  ;;  %v4303_v60 = vld [vmem:[#allocation47_spill] sm:$0xff] }
 0x2b1   : > { %1672 = vrot.lane.b32.xlu1 %v2397_v36, %s2641_s21  ;;  %v3792_v9 = vpack.c.b16 %v1468_v17, %v1465_v53  ;;  %v3794_v11 = vpack.c.b16 %v1467_v24, %v1464_v57  ;;  %1670 = vrot.lane.b32.xlu0 %v2393_v62, %s2641_s21  ;;  %v1963_v36 = vunpack.c.h.b16 %v1926_v41  ;;  %v2421_v53 = vor.u32 %v2474_v14, %v2420_v13  ;;  %v2380_v57 = vld [vmem:[#allocation2 + $0x28] sm:$0xf]  ;;  %v4301_v14 = vld [vmem:[#allocation42_spill] sm:$0xff]  ;;  %v2463_v13 = vld [vmem:[#allocation2 + $0x24] sm:$0xf] }
 0x2b2   : > { %1720 = vrot.lane.b32.xlu2 %v1645_v22, %s2639_s17  ;;  %v2422_v22 = vld [vmem:[#allocation2 + $0x34] sm:$0xf0]  ;;  %v3819_v17 = vpack.c.b16 %v1965_v33, %v1962_v35  ;;  %v1459_v24 = vunpack.c.h.b16 %v1422_v3  ;;  %v1462_v62 = vunpack.c.h.b16 %v1424_v29  ;;  %v1458_v0 = vunpack.c.l.b16 %v1422_v3  ;;  %v4304_v35 = vld [vmem:[#allocation41_spill] sm:$0xff] }
 0x2b3   : > { %v2425_v40 = vor.u32 %v2473_v61, %v2422_v22  ;;  %v3817_v19 = vpack.c.b16 %v1966_v34, %v1963_v36  ;;  %v2381_v41 = vor.u32 %v2465_v50, %v2380_v57  ;;  %v1694_v22 = vunpack.c.h.b16 %v1622_v52  ;;  %v4305_v50 = vld [vmem:[#allocation43_spill] sm:$0xff]  ;;  %v4307_v57 = vld [vmem:[#allocation32_spill] sm:$0xff] }
 0x2b4   : > { %v3824_v48 = vpack.c.b16 %v1462_v62, %v1459_v24  ;;  %v3826_v12 = vpack.c.b16 %v1461_v44, %v1458_v0  ;;  %v1943_v36 = vmul.f32 %v4301_v14, %v3709_v46  ;;  %v1944_v16 = vmul.f32 %v3716_v30, %v4302_v47  ;;  %v4308_v62 = vld [vmem:[#allocation35_spill] sm:$0xff] }
 0x2b5   : > { %v1537_v39 = vunpack.c.l.b16 %v1449_v2  ;;  %v1571_v54 = vmul.f32 %v4303_v60, %v3723_v21  ;;  %v1691_v34 = vunpack.c.h.b16 %v1620_v10  ;;  %v1940_v33 = vmul.f32 %v4304_v35, %v3703_v59  ;;  %v4309_v2 = vld [vmem:[#allocation34_spill] sm:$0xff]  ;;  %v4312_v35 = vld [vmem:[#allocation52_spill] sm:$0xff] }
 0x2b6   : > { %v1941_v61 = vmul.f32 %v3706_v15, %v4305_v50  ;;  %v1534_v58 = vunpack.c.l.b16 %v1447_v42  ;;  %v1568_v46 = vmul.f32 %v4306_v23, %v3713_v25  ;;  %v2377_v28 = vor.u32 %v2463_v13, %v2374_v56  ;;  %v4314_v23 = vld [vmem:[#allocation53_spill] sm:$0xff] }
 0x2b7   : > { %v1700_v3 = vpack.c.b16 %v1694_v22, %v1691_v34  ;;  %v1952_v30 = vpack.c.bf16 %v1944_v16, %v1943_v36  ;;  %v1439_v24 = vmul.f32 %v4307_v57, %v3743_v4  ;;  %v1440_v25 = vmul.f32 %v3745_v63, %v4308_v62  ;;  %v4310_v22 = vld [vmem:[#allocation38_spill] sm:$0xff] }
 0x2b8   : > { %v1543_v29 = vpack.c.b16 %v1537_v39, %v1534_v58  ;;  %v1950_v21 = vpack.c.bf16 %v1941_v61, %v1940_v33  ;;  %v1577_v59 = vpack.c.bf16 %v1568_v46, %v1568_v46  ;;  %v1690_v44 = vunpack.c.l.b16 %v1620_v10  ;;  %v4313_v58 = vld [vmem:[#allocation50_spill] sm:$0xff] }
 0x2b9   : > { %2012 = vrot.lane.b32.xlu1 %v2421_v53, %s2641_s21  ;;  %1512 = vrot.lane.b32.xlu0 %v2381_v41, %s2641_s21  ;;  %v1693_v53 = vunpack.c.l.b16 %v1622_v52  ;;  %v2039_v15 = vunpack.c.l.b16 %v1952_v30  ;;  %v1436_v42 = vmul.f32 %v4309_v2, %v3737_v26  ;;  %v1437_v14 = vmul.f32 %v3741_v27, %v4310_v22 }
 0x2ba   : > { %2014 = vrot.lane.b32.xlu2 %v2425_v40, %s2641_s21  ;;  %v1579_v40 = vpack.c.bf16 %v1571_v54, %v1571_v54  ;;  %v2036_v41 = vunpack.c.l.b16 %v1950_v21  ;;  %v1640_v36 = vunpack.c.l.b16 %v1577_v59  ;;  %v1448_v52 = vpack.c.bf16 %v1440_v25, %v1439_v24  ;;  %v4311_v54 = vld [vmem:[#allocation48_spill] sm:$0xff] }
 0x2bb   : > { %v1699_v47 = vpack.c.b16 %v1693_v53, %v1690_v44  ;;  %v1446_v56 = vpack.c.bf16 %v1437_v14, %v1436_v42  ;;  %v2040_v10 = vunpack.c.h.b16 %v1952_v30  ;;  %v1569_v34 = vmul.f32 %v4311_v54, %v3743_v4  ;;  %v3869_v53 = vpop.permute.xlu0 %2010  ;;  %v1509_v44 = vpop.permute.xlu1 %1508 }
 0x2bc   : > { %v1643_v0 = vunpack.c.l.b16 %v1579_v40  ;;  %v2045_v16 = vpack.c.b16 %v2039_v15, %v2036_v41  ;;  %v1535_v60 = vunpack.c.l.b16 %v1448_v52  ;;  %v1570_v33 = vmul.f32 %v3745_v63, %v4312_v35  ;;  %v3865_v40 = vpop.permute.xlu2 %1712 }
 0x2bd   : > { %v2037_v50 = vunpack.c.h.b16 %v1950_v21  ;;  %v1532_v61 = vunpack.c.l.b16 %v1446_v56  ;;  %v1566_v13 = vmul.f32 %v4313_v58, %v3737_v26  ;;  %v1567_v46 = vmul.f32 %v3741_v27, %v4314_v23 }
 0x2be   : > { %v1649_v39 = vpack.c.b16 %v1643_v0, %v1640_v36  ;;  %v1536_v30 = vunpack.c.h.b16 %v1448_v52  ;;  %v1533_v21 = vunpack.c.h.b16 %v1446_v56 }
 0x2bf   : > { %v1576_v4 = vpack.c.bf16 %v1567_v46, %v1566_v13 }
 0x2c0   : > { %v1542_v26 = vpack.c.b16 %v1536_v30, %v1533_v21 }
 0x2c1   : > { %1710 = vrot.lane.b32.xlu1 %v1700_v3, %s2643_s22  ;;  %1554 = vrot.lane.b32.xlu0 %v1543_v29, %s2643_s22  ;;  %v1541_v3 = vpack.c.b16 %v1535_v60, %v1532_v61  ;;  %v1578_v29 = vpack.c.bf16 %v1570_v33, %v1569_v34  ;;  %v1638_v59 = vunpack.c.l.b16 %v1576_v4  ;;  %v1639_v24 = vunpack.c.h.b16 %v1576_v4 }
 0x2c2   : > { %1510 = vrot.lane.b32.xlu2 %v2377_v28, %s2641_s21  ;;  %v2046_v28 = vpack.c.b16 %v2040_v10, %v2037_v50 }
 0x2c3   : > { %v1641_v63 = vunpack.c.l.b16 %v1578_v29  ;;  %v1642_v57 = vunpack.c.h.b16 %v1578_v29  ;;  %v3873_v25 = vpop.permute.xlu0 %2098  ;;  %v1503_v42 = vpop.permute.xlu1 %1502 }
 0x2c4   : > { %v1707_v27 = vpop.permute.xlu2 %1706 }
 0x2c5   : > { %v1647_v15 = vpack.c.b16 %v1641_v63, %v1638_v59  ;;  %v1648_v62 = vpack.c.b16 %v1642_v57, %v1639_v24 }
 0x2c9   : > { %2054 = vrot.lane.b32.xlu1 %v2045_v16, %s2643_s22  ;;  %1728 = vrot.lane.b32.xlu0 %v1649_v39, %s2639_s17 }
 0x2ca   : > { %1708 = vrot.lane.b32.xlu2 %v1699_v47, %s2643_s22 }
 0x2cb   : > { %v3877_v41 = vpop.permute.xlu0 %2092 }
 0x2d1   : > { %1550 = vrot.lane.b32.xlu1 %v1541_v3, %s2643_s22 }
 0x2d2   : > { %2056 = vrot.lane.b32.xlu2 %v2046_v28, %s2643_s22 }
 0x2d3   : > { %v3881_v22 = vpop.permute.xlu0 %2086 }
 0x2d9   : > { %1724 = vrot.lane.b32.xlu1 %v1647_v15, %s2639_s17 }
 0x2da   : > { %1552 = vrot.lane.b32.xlu2 %v1542_v26, %s2643_s22 }
 0x2e2   : > { %1726 = vrot.lane.b32.xlu2 %v1648_v62, %s2639_s17 }
 0x2e4   : > { %v1667_v0 = vpop.permute.xlu2 %1666 }
 0x2e5   : > { %1730 = vrot.lane.b32.xlu1 %v1667_v0, %s2639_s17 }
 0x2ec   : > { %v3879_v2 = vpop.permute.xlu2 %2008 }
 0x2f4   : > { %v3883_v14 = vpop.permute.xlu2 %1504 }
 0x2f5   : > { %v3887_v36 = vsel %vm496_vm4, %v1503_v42, %v3883_v14 }
 0x2fb   : > { %v2007_v47 = vpop.permute.xlu1 %2006  ;;  %v1669_v16 = vpop.permute.xlu0 %1668 }
 0x2fc   : > { %v2018_v52 = vsel %vm496_vm4, %v2007_v47, %v3879_v2  ;;  %v1674_v39 = vsel %vm496_vm4, %v1667_v0, %v1669_v16  ;;  %1734 = vrot.lane.b32.xlu0 %v1669_v16, %s2639_s17  ;;  %v2051_v56 = vpop.permute.xlu2 %2050 }
 0x2fd   : > { %1732 = vrot.lane.b32.xlu2 %v1674_v39, %s2639_s17  ;;  %v2061_v23 = vsel %vm539_vm5, %v2051_v56, %v3603_v51 }
 0x303   : > { %v1705_v10 = vpop.permute.xlu1 %1704  ;;  %v3894_v60 = vpop.permute.xlu0 %1506 }
 0x304   : > { %v1547_v54 = vpop.permute.xlu2 %1546  ;;  %v1715_v28 = vsel %vm539_vm5, %v1705_v10, %v1707_v27 }
 0x30b   : > { %v2049_v34 = vpop.permute.xlu1 %2048  ;;  %v1703_v35 = vpop.permute.xlu0 %1702 }
 0x30c   : > { %v1714_v33 = vsel %vm539_vm5, %v1703_v35, %v1705_v10  ;;  %1742 = vrot.lane.b32.xlu1 %v1703_v35, %s2639_s17  ;;  %v1721_v50 = vpop.permute.xlu2 %1720  ;;  %v2060_v58 = vsel %vm539_vm5, %v2049_v34, %v2051_v56  ;;  %v1515_v34 = vsel %vm496_vm4, %v3883_v14, %v3894_v60 }
 0x30d   : > { %1744 = vrot.lane.b32.xlu2 %v1714_v33, %s2639_s17 }
 0x313   : > { %v1545_v61 = vpop.permute.xlu1 %1544  ;;  %v1549_v13 = vpop.permute.xlu0 %1548 }
 0x314   : > { %1844 = vrot.lane.b32.xlu0 %v1549_v13, %s2640_s20  ;;  %2088 = vrot.lane.b32.xlu1 %v2060_v58, %s2638_s8  ;;  %v2015_v3 = vpop.permute.xlu2 %2014  ;;  %v1556_v29 = vsel %vm539_vm5, %v1545_v61, %v1547_v54  ;;  %v1557_v30 = vsel %vm539_vm5, %v1547_v54, %v1549_v13  ;;  %v2019_v54 = vsel %vm496_vm4, %v3879_v2, %v3869_v53 }
 0x315   : > { %2090 = vrot.lane.b32.xlu2 %v2061_v23, %s2638_s8  ;;  %v2021_v57 = vsel %vm496_vm4, %v2015_v3, %v3607_v55 }
 0x31b   : > { %v1719_v46 = vpop.permute.xlu1 %1718  ;;  %v1723_v4 = vpop.permute.xlu0 %1722 }
 0x31c   : > { %1746 = vrot.lane.b32.xlu0 %v1715_v28, %s2639_s17  ;;  %1840 = vrot.lane.b32.xlu1 %v1556_v29, %s2640_s20  ;;  %v1511_v59 = vpop.permute.xlu2 %1510  ;;  %v3921_v62 = vsel %vm637_vm2, %v1721_v50, %v1723_v4  ;;  %v3924_v0 = vsel %vm637_vm2, %v1719_v46, %v1721_v50  ;;  %v4316_v50 = vld [vmem:[#allocation12_spill] sm:$0xff]  ;;  %v4318_v46 = vld [vmem:[#allocation6_spill] sm:$0xff] }
 0x31d   : > { %1842 = vrot.lane.b32.xlu2 %v1557_v30, %s2640_s20  ;;  %v1516_v42 = vsel %vm496_vm4, %v1509_v44, %v1511_v59  ;;  %v4319_v28 = vpack.c.b16 %v3404_v31, %v4318_v46 }
 0x323   : > { %v1673_v51 = vpop.permute.xlu1 %1672  ;;  %v1671_v63 = vpop.permute.xlu0 %1670 }
 0x324   : > { %v1675_v21 = vsel %vm496_vm4, %v1671_v63, %v1673_v51  ;;  %1736 = vrot.lane.b32.xlu1 %v1671_v63, %s2639_s17  ;;  %1740 = vrot.lane.b32.xlu0 %v1673_v51, %s2639_s17  ;;  %v1709_v24 = vpop.permute.xlu2 %1708 }
 0x325   : > { %1738 = vrot.lane.b32.xlu2 %v1675_v21, %s2639_s17 }
 0x32b   : > { %v2013_v26 = vpop.permute.xlu1 %2012  ;;  %v1513_v15 = vpop.permute.xlu0 %1512 }
 0x32c   : > { %v2020_v27 = vsel %vm496_vm4, %v2013_v26, %v2015_v3  ;;  %v1517_v16 = vsel %vm496_vm4, %v1511_v59, %v1513_v15  ;;  %v2057_v39 = vpop.permute.xlu2 %2056 }
 0x32d   : > { %2082 = vrot.lane.b32.xlu1 %v2020_v27, %s2638_s8  ;;  %2084 = vrot.lane.b32.xlu2 %v2021_v57, %s2638_s8  ;;  %v2063_v14 = vsel %vm539_vm5, %v2057_v39, %v3597_v37 }
 0x333   : > { %v1555_v47 = vpop.permute.xlu0 %1554  ;;  %v1711_v55 = vpop.permute.xlu1 %1710 }
 0x334   : > { %1850 = vrot.lane.b32.xlu0 %v1555_v47, %s2640_s20  ;;  %v1717_v56 = vsel %vm539_vm5, %v1711_v55, %v3865_v40  ;;  %v1716_v10 = vsel %vm539_vm5, %v1709_v24, %v1711_v55  ;;  %v1553_v44 = vpop.permute.xlu2 %1552 }
 0x335   : > { %1834 = vrot.lane.b32.xlu1 %v1516_v42, %s2640_s20  ;;  %1836 = vrot.lane.b32.xlu2 %v1517_v16, %s2640_s20  ;;  %v1559_v13 = vsel %vm539_vm5, %v1553_v44, %v1555_v47 }
 0x33b   : > { %v2055_v40 = vpop.permute.xlu1 %2054  ;;  %v1729_v35 = vpop.permute.xlu0 %1728 }
 0x33c   : > { %1752 = vrot.lane.b32.xlu0 %v1717_v56, %s2639_s17  ;;  %v1727_v33 = vpop.permute.xlu2 %1726 }
 0x33d   : > { %1748 = vrot.lane.b32.xlu1 %v1709_v24, %s2639_s17  ;;  %1750 = vrot.lane.b32.xlu2 %v1716_v10, %s2639_s17  ;;  %v3952_v2 = vsel %vm637_vm2, %v1727_v33, %v1729_v35 }
 0x344   : > { %1838 = vrot.lane.b32.xlu0 %v1513_v15, %s2640_s20 }
 0x345   : > { %2076 = vrot.lane.b32.xlu1 %v2018_v52, %s2638_s8  ;;  %2078 = vrot.lane.b32.xlu2 %v2019_v54, %s2638_s8  ;;  %v1551_v52 = vpop.permute.xlu1 %1550 }
 0x34c   : > { %2080 = vrot.lane.b32.xlu0 %v3869_v53, %s2638_s8  ;;  %v2062_v53 = vsel %vm539_vm5, %v2055_v40, %v2057_v39 }
 0x34d   : > { %1828 = vrot.lane.b32.xlu1 %v3887_v36, %s2640_s20  ;;  %1830 = vrot.lane.b32.xlu2 %v1515_v34, %s2640_s20  ;;  %v4315_v36 = vld [vmem:[#allocation5_spill] sm:$0xff]  ;;  %v1725_v58 = vpop.permute.xlu1 %1724 }
 0x34e   : > { %v4317_v61 = vpack.c.b16 %v4315_v36, %v4316_v50 }
 0x354   : > { %1832 = vrot.lane.b32.xlu0 %v3894_v60, %s2640_s20 }
 0x355   : > { %2070 = vrot.lane.b32.xlu1 %v3770_v43, %s2638_s8  ;;  %2072 = vrot.lane.b32.xlu2 %v3772_v49, %s2638_s8  ;;  %v3970_v43 = vsel %vm637_vm2, %v1725_v58, %v1727_v33  ;;  %v1558_v49 = vsel %vm539_vm5, %v1551_v52, %v1553_v44 }
 0x357   : > { %v1733_v60 = vpop.permute.xlu2 %1732  ;;  %v1731_v23 = vpop.permute.xlu1 %1730 }
 0x358   : > { %v1758_v3 = vsel %vm637_vm2, %v1731_v23, %v1733_v60 }
 0x35c   : > { %2074 = vrot.lane.b32.xlu0 %v4317_v61, %s2638_s8 }
 0x35d   : > { %2094 = vrot.lane.b32.xlu1 %v2062_v53, %s2638_s8  ;;  %2096 = vrot.lane.b32.xlu2 %v2063_v14, %s2638_s8 }
 0x364   : > { %1826 = vrot.lane.b32.xlu0 %v1475_v1, %s2640_s20 }
 0x365   : > { %1846 = vrot.lane.b32.xlu1 %v1558_v49, %s2640_s20  ;;  %1848 = vrot.lane.b32.xlu2 %v1559_v13, %s2640_s20 }
 0x367   : > { %v1745_v37 = vpop.permute.xlu2 %1744 }
 0x36c   : > { %2068 = vrot.lane.b32.xlu0 %v4319_v28, %s2638_s8 }
 0x36d   : > { %1822 = vrot.lane.b32.xlu1 %v3794_v11, %s2640_s20  ;;  %1824 = vrot.lane.b32.xlu2 %v3792_v9, %s2640_s20 }
 0x36e   : > { %v1735_v9 = vpop.permute.xlu0 %1734 }
 0x36f   : > { %v3989_v8 = vpop.permute.xlu2 %2090  ;;  %v1759_v54 = vsel %vm637_vm2, %v1733_v60, %v1735_v9 }
 0x374   : > { %1820 = vrot.lane.b32.xlu0 %v1472_v32, %s2640_s20 }
 0x375   : > { %2064 = vrot.lane.b32.xlu1 %v3819_v17, %s2638_s8  ;;  %2066 = vrot.lane.b32.xlu2 %v3817_v19, %s2638_s8 }
 0x377   : > { %v1843_v31 = vpop.permute.xlu2 %1842 }
 0x37d   : > { %1816 = vrot.lane.b32.xlu1 %v3826_v12, %s2640_s20  ;;  %1818 = vrot.lane.b32.xlu2 %v3824_v48, %s2640_s20 }
 0x37e   : > { %v1743_v38 = vpop.permute.xlu1 %1742 }
 0x37f   : > { %v1739_v1 = vpop.permute.xlu2 %1738  ;;  %v1762_v16 = vsel %vm637_vm2, %v1743_v38, %v1745_v37 }
 0x386   : > { %v2089_v11 = vpop.permute.xlu1 %2088  ;;  %v1845_v18 = vpop.permute.xlu0 %1844 }
 0x387   : > { %v4003_v29 = vpop.permute.xlu2 %2084  ;;  %v2108_v30 = vsel %vm395_vm0, %v2089_v11, %v3989_v8  ;;  %v1861_v53 = vsel %vm930_vm3, %v1843_v31, %v1845_v18 }
 0x388   : > { %v2107_v50 = vsel %vm395_vm0, %v4003_v29, %v3881_v22  ;;  %v2616_v22 = vld [vmem:[%s4137_s1 + $0x18] sm:$0xff] }
 0x38e   : > { %v1841_v6 = vpop.permute.xlu1 %1840  ;;  %v1747_v17 = vpop.permute.xlu0 %1746 }
 0x38f   : > { %v4005_v32 = vpop.permute.xlu2 %1836  ;;  %v4014_v63 = vsel %vm930_vm3, %v1841_v6, %v1843_v31  ;;  %v1763_v47 = vsel %vm637_vm2, %v1745_v37, %v1747_v17 }
 0x396   : > { %v1737_v4 = vpop.permute.xlu1 %1736  ;;  %v1741_v12 = vpop.permute.xlu0 %1740 }
 0x397   : > { %v1751_v19 = vpop.permute.xlu2 %1750  ;;  %v1761_v10 = vsel %vm637_vm2, %v1739_v1, %v1741_v12  ;;  %v1760_v44 = vsel %vm637_vm2, %v1737_v4, %v1739_v1  ;;  %v2617_v4 = vld [vmem:[%s4137_s1 + $0x20] sm:$0xff] }
 0x398   : > { %v2618_v12 = vld [vmem:[%s4137_s1] sm:$0xff] }
 0x39f   : > { %v4009_v51 = vpop.permute.xlu1 %2082  ;;  %v4011_v48 = vpop.permute.xlu2 %2078 }
 0x3a0   : > { %v2106_v28 = vsel %vm395_vm0, %v4009_v51, %v4003_v29 }
 0x3a6   : > { %v1851_v21 = vpop.permute.xlu0 %1850 }
 0x3a7   : > { %v4016_v59 = vpop.permute.xlu1 %1834  ;;  %v4018_v26 = vpop.permute.xlu2 %1830 }
 0x3a8   : > { %v1858_v9 = vsel %vm930_vm3, %v4016_v59, %v4005_v32 }
 0x3ae   : > { %v1753_v15 = vpop.permute.xlu0 %1752 }
 0x3af   : > { %v1749_v27 = vpop.permute.xlu1 %1748  ;;  %v4020_v57 = vpop.permute.xlu2 %2072  ;;  %v1765_v24 = vsel %vm637_vm2, %v1751_v19, %v1753_v15 }
 0x3b0   : > { %v1764_v42 = vsel %vm637_vm2, %v1749_v27, %v1751_v19  ;;  %1799 = vmatpush.bf16.msrb.mxu3 %v1765_v24 }
 0x3b1   : > { %1780 = vmatpush.bf16.msrb.mxu2 %v1764_v42 }
 0x3b4   : > { %1800 = vmatpush.bf16.msrb.mxu3 %v1763_v47 }
 0x3b5   : > { %1781 = vmatpush.bf16.msrb.mxu2 %v1762_v16 }
 0x3b6   : > { %v1839_v55 = vpop.permute.xlu0 %1838 }
 0x3b7   : > { %v2077_v39 = vpop.permute.xlu1 %2076  ;;  %v2097_v56 = vpop.permute.xlu2 %2096 }
 0x3b8   : > { %1801 = vmatpush.bf16.msrb.mxu3 %v1761_v10  ;;  %v2111_v52 = vsel %vm395_vm0, %v2097_v56, %v3873_v25  ;;  %v1859_v25 = vsel %vm930_vm3, %v4005_v32, %v1839_v55 }
 0x3b9   : > { %1782 = vmatpush.bf16.msrb.mxu2 %v1760_v44  ;;  %v2621_v44 = vld [vmem:[%s2723_s14 + $0x8] sm:$0xff] }
 0x3bc   : > { %1802 = vmatpush.bf16.msrb.mxu3 %v1759_v54 }
 0x3bd   : > { %1783 = vmatpush.bf16.msrb.mxu2 %v1758_v3 }
 0x3be   : > { %v2081_v40 = vpop.permute.xlu0 %2080 }
 0x3bf   : > { %v1829_v34 = vpop.permute.xlu1 %1828  ;;  %v1849_v35 = vpop.permute.xlu2 %1848 }
 0x3c0   : > { %v1863_v33 = vsel %vm930_vm3, %v1849_v35, %v1851_v21  ;;  %1803 = vmatpush.bf16.msrb.mxu3 %v3952_v2  ;;  %v2615_v2 = vld [vmem:[%s4137_s1 + $0x10] sm:$0xff]  ;;  %v1856_v29 = vsel %vm930_vm3, %v1829_v34, %v4018_v26  ;;  %v2620_v21 = vld [vmem:[%s4137_s1 + $0x8] sm:$0xff] }
 0x3c1   : > { %1784 = vmatpush.bf16.msrb.mxu2 %v3970_v43  ;;  %1897 = vmatpush.bf16.msra.mxu1 %v1863_v33  ;;  %v2105_v43 = vsel %vm395_vm0, %v4011_v48, %v2081_v40 }
 0x3c4   : > { %1804 = vmatpush.bf16.msrb.mxu3 %v3921_v62  ;;  %v2109_v62 = vsel %vm395_vm0, %v3989_v8, %v3877_v41  ;;  %v2104_v8 = vsel %vm395_vm0, %v2077_v39, %v4011_v48 }
 0x3c5   : > { %1785 = vmatpush.bf16.msrb.mxu2 %v3924_v0  ;;  %1898 = vmatpush.bf16.msra.mxu1 %v1861_v53 }
 0x3c6   : > { %v1833_v14 = vpop.permute.xlu0 %1832 }
 0x3c7   : > { %v2071_v36 = vpop.permute.xlu1 %2070  ;;  %2400 = vmatmul.msk.bf16.vlgmr.msrb.gmra.mxu3 %vm839_vm7, %v2615_v2  ;;  %v1857_v0 = vsel %vm930_vm3, %v4018_v26, %v1833_v14  ;;  %v1825_v41 = vpop.permute.xlu2 %1824 }
 0x3c8   : > { %2145 = vmatpush.bf16.msra.mxu3 %v2111_v52  ;;  %2398 = vmatmul.msk.bf16.vlgmr.msrb.gmra.mxu2 %vm839_vm7, %v2615_v2  ;;  %v2102_v11 = vsel %vm395_vm0, %v2071_v36, %v4020_v57 }
 0x3c9   : > { %1899 = vmatpush.bf16.msra.mxu1 %v1859_v25 }
 0x3cc   : > { %2146 = vmatpush.bf16.msra.mxu3 %v2109_v62  ;;  %v2622_v62 = vld [vmem:[%s2723_s14] sm:$0xff] }
 0x3cd   : > { %1900 = vmatpush.bf16.msra.mxu1 %v1857_v0 }
 0x3ce   : > { %v2075_v61 = vpop.permute.xlu0 %2074 }
 0x3cf   : > { %v2095_v58 = vpop.permute.xlu1 %2094  ;;  %v2103_v49 = vsel %vm395_vm0, %v4020_v57, %v2075_v61  ;;  %v2067_v3 = vpop.permute.xlu2 %2066 }
 0x3d0   : > { %2147 = vmatpush.bf16.msra.mxu3 %v2107_v50  ;;  %v2110_v60 = vsel %vm395_vm0, %v2095_v58, %v2097_v56  ;;  %v2623_v50 = vld [vmem:[%s2723_s14 + $0x18] sm:$0xff] }
 0x3d1   : > { %2126 = vmatpush.bf16.msra.mxu2 %v2110_v60 }
 0x3d4   : > { %2148 = vmatpush.bf16.msra.mxu3 %v2105_v43 }
 0x3d5   : > { %2127 = vmatpush.bf16.msra.mxu2 %v2108_v30 }
 0x3d6   : > { %v1827_v13 = vpop.permute.xlu0 %1826 }
 0x3d7   : > { %v1847_v37 = vpop.permute.xlu1 %1846  ;;  %2401 = vmatmul.msk.bf16.gmra.mxu3 %vm839_vm7, %v2616_v22  ;;  %v1855_v46 = vsel %vm930_vm3, %v1825_v41, %v1827_v13  ;;  %v1819_v18 = vpop.permute.xlu2 %1818 }
 0x3d8   : > { %2149 = vmatpush.bf16.msra.mxu3 %v2103_v49  ;;  %v1862_v23 = vsel %vm930_vm3, %v1847_v37, %v1849_v35  ;;  %2399 = vmatmul.msk.bf16.gmra.mxu2 %vm839_vm7, %v2616_v22 }
 0x3d9   : > { %1901 = vmatpush.bf16.msra.mxu1 %v1855_v46  ;;  %1878 = vmatpush.bf16.msra.mxu0 %v1862_v23  ;;  %v2624_v46 = vld [vmem:[%s2723_s14 + $0x10] sm:$0xff] }
 0x3da   : > { %2128 = vmatpush.bf16.msra.mxu2 %v2106_v28 }
 0x3dd   : > { %1879 = vmatpush.bf16.msra.mxu0 %v4014_v63  ;;  %v2619_v63 = vld [vmem:[%s4137_s1 + $0x28] sm:$0xff] }
 0x3de   : > { %2129 = vmatpush.bf16.msra.mxu2 %v2104_v8  ;;  %v2069_v31 = vpop.permute.xlu0 %2068 }
 0x3df   : > { %v1823_v38 = vpop.permute.xlu1 %1822  ;;  %v2101_v1 = vsel %vm395_vm0, %v2067_v3, %v2069_v31 }
 0x3e0   : > { %2150 = vmatpush.bf16.msra.mxu3 %v2101_v1  ;;  %v1854_v19 = vsel %vm930_vm3, %v1823_v38, %v1825_v41 }
 0x3e1   : > { %1880 = vmatpush.bf16.msra.mxu0 %v1858_v9 }
 0x3e2   : > { %2130 = vmatpush.bf16.msra.mxu2 %v2102_v11 }
 0x3e5   : > { %1881 = vmatpush.bf16.msra.mxu0 %v1856_v29 }
 0x3e6   : > { %v1821_v6 = vpop.permute.xlu0 %1820 }
 0x3e7   : > { %v2065_v17 = vpop.permute.xlu1 %2064  ;;  %2432 = vmatmul.msk.bf16.vlgmr.msra.gmra.mxu3 %vm839_vm7, %v2617_v4  ;;  %v1853_v32 = vsel %vm930_vm3, %v1819_v18, %v1821_v6 }
 0x3e8   : > { %v2100_v30 = vsel %vm395_vm0, %v2065_v17, %v2067_v3  ;;  %1902 = vmatpush.bf16.msra.mxu1 %v1853_v32  ;;  %v2625_v3 = vld [vmem:[%s2723_s14 + $0x28] sm:$0xff] }
 0x3e9   : > { %1882 = vmatpush.bf16.msra.mxu0 %v1854_v19  ;;  %2131 = vmatpush.bf16.msra.mxu2 %v2100_v30  ;;  %v2627_v19 = vld [vmem:[%s2723_s14 + $0x38] sm:$0xff] }
 0x3eb   : > { %2404 = vmatmul.msk.bf16.vlgmr.msra.gmra.mxu1 %vm839_vm7, %v2618_v12 }
 0x3ec   : > { %2430 = vmatmul.msk.bf16.vlgmr.msra.gmra.mxu2 %vm839_vm7, %v2617_v4  ;;  %v2626_v4 = vld [vmem:[%s2723_s14 + $0x20] sm:$0xff] }
 0x3ef   : > { %v1817_v51 = vpop.permute.xlu1 %1816 }
 0x3f0   : > { %v1852_v48 = vsel %vm930_vm3, %v1817_v51, %v1819_v18 }
 0x3f1   : > { %1883 = vmatpush.bf16.msra.mxu0 %v1852_v48 }
 0x3f4   : > { %2402 = vmatmul.msk.bf16.vlgmr.msra.gmra.mxu0 %vm839_vm7, %v2618_v12 }
 0x3f7   : > { %2433 = vmatmul.msk.bf16.gmra.mxu3 %vm839_vm7, %v2619_v63 }
 0x3fb   : > { %2405 = vmatmul.msk.bf16.gmra.mxu1 %vm839_vm7, %v2620_v21 }
 0x3fc   : > { %2431 = vmatmul.msk.bf16.gmra.mxu2 %vm839_vm7, %v2619_v63 }
 0x404   : > { %2403 = vmatmul.msk.bf16.gmra.mxu0 %vm839_vm7, %v2620_v21 }
 0x44a   : > { %v1806_v59 = vpop.f32.mrf.mxu3 }
 0x44b   : > { %v1787_v26 = vpop.f32.mrf.mxu2 }
 0x452   : > { %v1808_v15 = vpop.f32.mrf.mxu3 }
 0x453   : > { %v1789_v27 = vpop.f32.mrf.mxu2 }
 0x45a   : > { %v1811_v57 = vpop.f32.mrf.mxu3 }
 0x45b   : > { %v1792_v24 = vpop.f32.mrf.mxu2 }
 0x462   : > { %v1813_v42 = vpop.f32.mrf.mxu3 }
 0x463   : > { %v1794_v47 = vpop.f32.mrf.mxu2 }
 0x468   : > { %v1904_v16 = vpop.f32.mrf.mxu1 }
 0x469   : > { %v1905_v55 = vadd.f32 %v1904_v16, %v1806_v59  ;;  %v2628_v59 = vld [vmem:[%s2723_s14 + $0x30] sm:$0xff] }
 0x46a   : > { %v2152_v39 = vpop.f32.mrf.mxu3 }
 0x46b   : > { %v2163_v56 = vadd.f32 %v2152_v39, %v1905_v55 }
 0x46d   : > { %v2171_v10 = vadd.f32 %v2163_v56, %v3592_v45 }
 0x46f   : > { %v2179_v54 = vadd.f32 %v2621_v44, %v2171_v10  ;;  %v2133_v40 = vpop.f32.mrf.mxu2 }
 0x470   : > { %v1906_v34 = vpop.f32.mrf.mxu1 }
 0x471   : > { %v1885_v35 = vpop.f32.mrf.mxu0  ;;  %2187 = vst [vmem:[%s4108_s15 + $0x8] sm:$0xff] %v2179_v54  ;;  %v1907_v33 = vadd.f32 %v1906_v34, %v1808_v15 }
 0x472   : > { %v1886_v52 = vadd.f32 %v1885_v35, %v1787_v26  ;;  %v2154_v53 = vpop.f32.mrf.mxu3 }
 0x473   : > { %v2165_v36 = vadd.f32 %v2154_v53, %v1907_v33 }
 0x474   : > { %v2162_v14 = vadd.f32 %v2133_v40, %v1886_v52 }
 0x475   : > { %v2173_v25 = vadd.f32 %v2165_v36, %v3617_v5 }
 0x476   : > { %v2170_v2 = vadd.f32 %v2162_v14, %v3592_v45 }
 0x477   : > { %v2181_v61 = vadd.f32 %v2623_v50, %v2173_v25  ;;  %v2135_v58 = vpop.f32.mrf.mxu2 }
 0x478   : > { %v2178_v0 = vadd.f32 %v2622_v62, %v2170_v2  ;;  %v1909_v60 = vpop.f32.mrf.mxu1 }
 0x479   : > { %v1887_v43 = vpop.f32.mrf.mxu0  ;;  %v1910_v41 = vadd.f32 %v1909_v60, %v1811_v57  ;;  %2189 = vst [vmem:[%s4108_s15 + $0x18] sm:$0xff] %v2181_v61 }
 0x47a   : > { %2186 = vst [vmem:[%s4108_s15] sm:$0xff] %v2178_v0  ;;  %v1888_v49 = vadd.f32 %v1887_v43, %v1789_v27  ;;  %v2157_v13 = vpop.f32.mrf.mxu3 }
 0x47b   : > { %v2167_v45 = vadd.f32 %v2157_v13, %v1910_v41 }
 0x47c   : > { %v2164_v37 = vadd.f32 %v2135_v58, %v1888_v49 }
 0x47d   : > { %v2175_v23 = vadd.f32 %v2167_v45, %v3612_v20 }
 0x47e   : > { %v2172_v22 = vadd.f32 %v2164_v37, %v3617_v5 }
 0x47f   : > { %v2183_v8 = vadd.f32 %v2625_v3, %v2175_v23  ;;  %v2138_v31 = vpop.f32.mrf.mxu2 }
 0x480   : > { %v2180_v28 = vadd.f32 %v2624_v46, %v2172_v22  ;;  %v1911_v38 = vpop.f32.mrf.mxu1 }
 0x481   : > { %v1890_v1 = vpop.f32.mrf.mxu0  ;;  %v1912_v9 = vadd.f32 %v1911_v38, %v1813_v42  ;;  %2191 = vst [vmem:[%s4108_s15 + $0x28] sm:$0xff] %v2183_v8 }
 0x482   : > { %2188 = vst [vmem:[%s4108_s15 + $0x10] sm:$0xff] %v2180_v28  ;;  %v1891_v11 = vadd.f32 %v1890_v1, %v1792_v24  ;;  %v2159_v29 = vpop.f32.mrf.mxu3 }
 0x483   : > { %v2169_v18 = vadd.f32 %v2159_v29, %v1912_v9 }
 0x484   : > { %v2166_v5 = vadd.f32 %v2138_v31, %v1891_v11 }
 0x485   : > { %v2177_v17 = vadd.f32 %v2169_v18, %v3629_v7 }
 0x486   : > { %v2174_v6 = vadd.f32 %v2166_v5, %v3612_v20 }
 0x487   : > { %v2185_v30 = vadd.f32 %v2627_v19, %v2177_v17  ;;  %v2140_v48 = vpop.f32.mrf.mxu2 }
 0x488   : > { %v2182_v32 = vadd.f32 %v2626_v4, %v2174_v6 }
 0x489   : > { %v1892_v12 = vpop.f32.mrf.mxu0  ;;  %2193 = vst [vmem:[%s4108_s15 + $0x38] sm:$0xff] %v2185_v30 }
 0x48a   : > { %2190 = vst [vmem:[%s4108_s15 + $0x20] sm:$0xff] %v2182_v32  ;;  %v1893_v51 = vadd.f32 %v1892_v12, %v1794_v47 }
 0x48c   : > { %v2168_v63 = vadd.f32 %v2140_v48, %v1893_v51 }
 0x48e   : > { %v2176_v21 = vadd.f32 %v2168_v63, %v3629_v7 }
 0x490   : > { %v2184_v26 = vadd.f32 %v2628_v59, %v2176_v21 }
 0x492   : > { %2192 = vst [vmem:[%s4108_s15 + $0x30] sm:$0xff] %v2184_v26 }
 0x493 PF: > { %s15_s18 = sadd.s32 1, %s2635_s18  }
 0x494   : > { %p12_p4 = scmp.ge.s32.totalorder %s15_s18, 4  }
 0x496   :  { %14 = sbr.rel (!%p12_p4) target bundleno = 1 (0x1), region = 70 }

</bundles_post_ra>
